<compile_context>
chip_gen: v7x
topology: tpu7x:2x2x1
jax: 0.10.0
libtpu: 0.0.40
codegen_flags: <defaults>
</compile_context>

<pallas_src>
import jax
import jax.numpy as jnp
from jax.experimental import pallas as pl
from jax.experimental.pallas import tpu as pltpu

# ---- synthetic backbone config (small) ----
VOCAB = 128
HIDDEN = 32
LAYERS = 2
HEADS = 2
HEAD_DIM = HIDDEN // HEADS
INTERMEDIATE = 64
MAX_POS = 16
NUM_EMO = 9          # len(ARTEMIS_EMOTIONS)
PAD_N = 128          # lane-dense logits slab; sliced to NUM_EMO in the wrapper
LN_EPS = 1e-12
LANGS = ("english", "arabic", "chinese")


# ---------------- fused Pallas kernel (whole forward, one batch row / step) ----------------

def _fused_forward_kernel(
    x_ref, bias_ref,
    emb_g_ref, emb_b_ref,
    wqkv_ref, bqkv_ref, wo_ref, bo_ref,
    ln1g_ref, ln1b_ref, w1_ref, b1_ref, w2_ref, b2_ref, ln2g_ref, ln2b_ref,
    pool_w_ref, pool_b_ref, head_w_ref, head_b_ref,
    out_ref,
):
    x = x_ref[0]                       # [S, HIDDEN], already f32
    bias = bias_ref[0]                 # [1, S] additive mask bias (0 / -1e9)

    def layernorm(v, g, b):
        mu = jnp.mean(v, axis=-1, keepdims=True)
        var = jnp.mean(jnp.square(v - mu), axis=-1, keepdims=True)
        return (v - mu) * jax.lax.rsqrt(var + LN_EPS) * g + b

    x = layernorm(x, emb_g_ref[...], emb_b_ref[...])

    scale = 1.0 / (HEAD_DIM ** 0.5)
    qk_dims = (((1,), (1,)), ((), ()))     # contract last dims: q @ k^T, no transpose

    for l in range(LAYERS):                # static unroll (LAYERS=2)
        # fused QKV projection: [S, H] @ [H, 3H]
        qkv = jnp.dot(x, wqkv_ref[l], preferred_element_type=jnp.float32) + bqkv_ref[l]
        wo_l = wo_ref[l]
        attn_out = bo_ref[l]               # [1, H] -> broadcasts to [S, H] on first add
        for h in range(HEADS):             # static unroll (HEADS=2)
            c0 = h * HEAD_DIM
            q = qkv[:, c0:c0 + HEAD_DIM]
            k = qkv[:, HIDDEN + c0:HIDDEN + c0 + HEAD_DIM]
            v = qkv[:, 2 * HIDDEN + c0:2 * HIDDEN + c0 + HEAD_DIM]
            s = jax.lax.dot_general(q, k, qk_dims,
                                    preferred_element_type=jnp.float32) * scale + bias
            m = jnp.max(s, axis=-1, keepdims=True)
            p = jnp.exp(s - m)
            denom = jnp.sum(p, axis=-1, keepdims=True)
            p = p * pl.reciprocal(denom, approx=True)
            ctx_h = jnp.dot(p, v, preferred_element_type=jnp.float32)      # [S, HEAD_DIM]
            # sum_h ctx_h @ wo[rows of head h]  ==  concat_h(ctx_h) @ wo
            attn_out = attn_out + jnp.dot(
                ctx_h, wo_l[c0:c0 + HEAD_DIM, :], preferred_element_type=jnp.float32)
        x = layernorm(x + attn_out, ln1g_ref[l], ln1b_ref[l])

        ff = jnp.dot(x, w1_ref[l], preferred_element_type=jnp.float32) + b1_ref[l]
        # HF BERT uses erf-GELU; tanh approximation kept for robust Mosaic lowering
        # (documented tolerance ~1e-3 vs the erf variant).
        ff = jax.nn.gelu(ff, approximate=True)
        ff = jnp.dot(ff, w2_ref[l], preferred_element_type=jnp.float32) + b2_ref[l]
        x = layernorm(x + ff, ln2g_ref[l], ln2b_ref[l])

    # BERT pooler on the [CLS] token; pooler activation is nn.Identity (as set in
    # the module); dropout(p=0.1) is identity at inference (module is eval()'d).
    cls = x[0:1, :]
    pooled = jnp.dot(cls, pool_w_ref[...], preferred_element_type=jnp.float32) + pool_b_ref[...]
    logits = jnp.dot(pooled, head_w_ref[...], preferred_element_type=jnp.float32) + head_b_ref[...]
    out_ref[0] = logits.astype(out_ref.dtype)


# ---------------- deterministic parameter init ----------------

def init_params(key):
    def nrm(key, shape):
        return 0.02 * jax.random.normal(key, shape, dtype=jnp.float32)

    keys = iter(jax.random.split(key, 256))
    params = {
        "word_emb": nrm(next(keys), (VOCAB, HIDDEN)),
        "pos_emb": nrm(next(keys), (MAX_POS, HIDDEN)),
        "type_emb": nrm(next(keys), (2, HIDDEN)),
        "emb_ln_g": jnp.ones((HIDDEN,), jnp.float32),
        "emb_ln_b": jnp.zeros((HIDDEN,), jnp.float32),
        "layers": [],
        "pooler_w": nrm(next(keys), (HIDDEN, HIDDEN)),
        "pooler_b": jnp.zeros((HIDDEN,), jnp.float32),
        "heads": {},
    }
    for _ in range(LAYERS):
        params["layers"].append({
            "wq": nrm(next(keys), (HIDDEN, HIDDEN)), "bq": jnp.zeros((HIDDEN,), jnp.float32),
            "wk": nrm(next(keys), (HIDDEN, HIDDEN)), "bk": jnp.zeros((HIDDEN,), jnp.float32),
            "wv": nrm(next(keys), (HIDDEN, HIDDEN)), "bv": jnp.zeros((HIDDEN,), jnp.float32),
            "wo": nrm(next(keys), (HIDDEN, HIDDEN)), "bo": jnp.zeros((HIDDEN,), jnp.float32),
            "ln1_g": jnp.ones((HIDDEN,), jnp.float32), "ln1_b": jnp.zeros((HIDDEN,), jnp.float32),
            "w1": nrm(next(keys), (HIDDEN, INTERMEDIATE)), "b1": jnp.zeros((INTERMEDIATE,), jnp.float32),
            "w2": nrm(next(keys), (INTERMEDIATE, HIDDEN)), "b2": jnp.zeros((HIDDEN,), jnp.float32),
            "ln2_g": jnp.ones((HIDDEN,), jnp.float32), "ln2_b": jnp.zeros((HIDDEN,), jnp.float32),
        })
    for lang in LANGS:
        params["heads"][lang] = {
            "w": nrm(next(keys), (HIDDEN, NUM_EMO)),
            "b": jnp.zeros((NUM_EMO,), jnp.float32),
        }
    return params


# ---------------- forward (mirrors ThreeHeadedMonster.forward) ----------------

def monster_forward(params, input_ids, token_type_ids, attention_mask, language):
    assert language in LANGS, f"Language {language} is not supported."
    B, S = input_ids.shape

    # --- embeddings (gather is plain-JAX glue, not the hot path) ---
    tt = token_type_ids if token_type_ids is not None else jnp.zeros_like(input_ids)
    x_emb = (params["word_emb"][input_ids]
             + params["pos_emb"][jnp.arange(S)][None, :, :]
             + params["type_emb"][tt]).astype(jnp.float32)          # [B, S, H]

    # attention_mask -> additive bias [B, 1, S]; broadcast over heads/queries in-kernel.
    bias = ((1.0 - attention_mask.astype(jnp.float32)) * -1e9)[:, None, :]

    L = params["layers"]

    def stackw(name):                          # [L, in, out]
        return jnp.stack([l[name] for l in L], axis=0)

    def stackb(name):                          # [L, 1, N]
        return jnp.stack([l[name].reshape(1, -1) for l in L], axis=0)

    # fused QKV weights: [L, H, 3H] / [L, 1, 3H]
    wqkv = jnp.stack(
        [jnp.concatenate([l["wq"], l["wk"], l["wv"]], axis=1) for l in L], axis=0)
    bqkv = jnp.stack(
        [jnp.concatenate([l["bq"], l["bk"], l["bv"]], axis=0).reshape(1, -1) for l in L], axis=0)

    # selected language head, padded to a 128-lane-dense slab
    head = params["heads"][language]
    head_w = jnp.zeros((HIDDEN, PAD_N), jnp.float32).at[:, :NUM_EMO].set(head["w"])
    head_b = jnp.zeros((1, PAD_N), jnp.float32).at[:, :NUM_EMO].set(head["b"])

    operands = (
        x_emb, bias,
        params["emb_ln_g"].reshape(1, HIDDEN), params["emb_ln_b"].reshape(1, HIDDEN),
        wqkv, bqkv, stackw("wo"), stackb("bo"),
        stackb("ln1_g"), stackb("ln1_b"),
        stackw("w1"), stackb("b1"), stackw("w2"), stackb("b2"),
        stackb("ln2_g"), stackb("ln2_b"),
        params["pooler_w"], params["pooler_b"].reshape(1, HIDDEN),
        head_w, head_b,
    )

    def _const_spec(arr):
        # full array resident in VMEM; constant block index -> no re-DMA across steps
        zeros = (0,) * arr.ndim
        return pl.BlockSpec(arr.shape, lambda b, z=zeros: z)

    in_specs = [
        pl.BlockSpec((1, S, HIDDEN), lambda b: (b, 0, 0)),   # x_emb: one batch row / step
        pl.BlockSpec((1, 1, S), lambda b: (b, 0, 0)),        # mask bias
    ] + [_const_spec(a) for a in operands[2:]]

    out_pad = pl.pallas_call(
        _fused_forward_kernel,
        out_shape=jax.ShapeDtypeStruct((B, 1, PAD_N), jnp.float32),
        grid=(B,),
        in_specs=in_specs,
        out_specs=pl.BlockSpec((1, 1, PAD_N), lambda b: (b, 0, 0)),
        compiler_params=pltpu.CompilerParams(dimension_semantics=("parallel",)),
    )(*operands)

    # slice the lane-dense slab down to the real emotion logits
    return out_pad[:, 0, :NUM_EMO]


if __name__ == "__main__":
    key = jax.random.PRNGKey(0)
    k_ids, k_params = jax.random.split(key)

    B, S = 2, 8
    input_ids = jax.random.randint(k_ids, (B, S), 0, VOCAB, dtype=jnp.int32)
    attention_mask = jnp.array(
        [[1, 1, 1, 1, 1, 1, 1, 1],
         [1, 1, 1, 1, 1, 0, 0, 0]], dtype=jnp.int32)
    token_type_ids = None  # unused, exactly as in the PyTorch forward

    params = init_params(k_params)

    logits = monster_forward(params, input_ids, token_type_ids,
                             attention_mask, language="english")
    logits = jax.block_until_ready(logits)
    assert logits.shape == (B, NUM_EMO)
    assert bool(jnp.all(jnp.isfinite(logits)))
    print("KERNEL_OK")
</pallas_src>

<mosaic_0001>
module attributes {stable_mosaic.version = 11 : i64} {
  func.func @_fused_forward_kernel(%arg0: i32, %arg1: memref<1x8x32xf32, #tpu.memory_space<vmem>>, %arg2: memref<1x1x8xf32, #tpu.memory_space<vmem>>, %arg3: memref<1x32xf32, #tpu.memory_space<vmem>>, %arg4: memref<1x32xf32, #tpu.memory_space<vmem>>, %arg5: memref<2x32x96xf32, #tpu.memory_space<vmem>>, %arg6: memref<2x1x96xf32, #tpu.memory_space<vmem>>, %arg7: memref<2x32x32xf32, #tpu.memory_space<vmem>>, %arg8: memref<2x1x32xf32, #tpu.memory_space<vmem>>, %arg9: memref<2x1x32xf32, #tpu.memory_space<vmem>>, %arg10: memref<2x1x32xf32, #tpu.memory_space<vmem>>, %arg11: memref<2x32x64xf32, #tpu.memory_space<vmem>>, %arg12: memref<2x1x64xf32, #tpu.memory_space<vmem>>, %arg13: memref<2x64x32xf32, #tpu.memory_space<vmem>>, %arg14: memref<2x1x32xf32, #tpu.memory_space<vmem>>, %arg15: memref<2x1x32xf32, #tpu.memory_space<vmem>>, %arg16: memref<2x1x32xf32, #tpu.memory_space<vmem>>, %arg17: memref<32x32xf32, #tpu.memory_space<vmem>>, %arg18: memref<1x32xf32, #tpu.memory_space<vmem>>, %arg19: memref<32x128xf32, #tpu.memory_space<vmem>>, %arg20: memref<1x128xf32, #tpu.memory_space<vmem>>, %arg21: memref<1x1x128xf32, #tpu.memory_space<vmem>>) attributes {dimension_semantics = [#tpu.dimension_semantics<parallel>], iteration_bounds = array<i64: 2>, scalar_prefetch = 0 : i64, scratch_operands = 0 : i64, tpu.core_type = #tpu.core_type<tc>, window_params = [{transform_indices = @transform_0, window_bounds = array<i64: 1, 8, 32>}, {transform_indices = @transform_1, window_bounds = array<i64: 1, 1, 8>}, {pipeline_mode = #tpu.pipeline_mode<synchronous>, transform_indices = @transform_2, window_bounds = array<i64: 1, 32>}, {pipeline_mode = #tpu.pipeline_mode<synchronous>, transform_indices = @transform_3, window_bounds = array<i64: 1, 32>}, {pipeline_mode = #tpu.pipeline_mode<synchronous>, transform_indices = @transform_4, window_bounds = array<i64: 2, 32, 96>}, {pipeline_mode = #tpu.pipeline_mode<synchronous>, transform_indices = @transform_5, window_bounds = array<i64: 2, 1, 96>}, {pipeline_mode = #tpu.pipeline_mode<synchronous>, transform_indices = @transform_6, window_bounds = array<i64: 2, 32, 32>}, {pipeline_mode = #tpu.pipeline_mode<synchronous>, transform_indices = @transform_7, window_bounds = array<i64: 2, 1, 32>}, {pipeline_mode = #tpu.pipeline_mode<synchronous>, transform_indices = @transform_8, window_bounds = array<i64: 2, 1, 32>}, {pipeline_mode = #tpu.pipeline_mode<synchronous>, transform_indices = @transform_9, window_bounds = array<i64: 2, 1, 32>}, {pipeline_mode = #tpu.pipeline_mode<synchronous>, transform_indices = @transform_10, window_bounds = array<i64: 2, 32, 64>}, {pipeline_mode = #tpu.pipeline_mode<synchronous>, transform_indices = @transform_11, window_bounds = array<i64: 2, 1, 64>}, {pipeline_mode = #tpu.pipeline_mode<synchronous>, transform_indices = @transform_12, window_bounds = array<i64: 2, 64, 32>}, {pipeline_mode = #tpu.pipeline_mode<synchronous>, transform_indices = @transform_13, window_bounds = array<i64: 2, 1, 32>}, {pipeline_mode = #tpu.pipeline_mode<synchronous>, transform_indices = @transform_14, window_bounds = array<i64: 2, 1, 32>}, {pipeline_mode = #tpu.pipeline_mode<synchronous>, transform_indices = @transform_15, window_bounds = array<i64: 2, 1, 32>}, {pipeline_mode = #tpu.pipeline_mode<synchronous>, transform_indices = @transform_16, window_bounds = array<i64: 32, 32>}, {pipeline_mode = #tpu.pipeline_mode<synchronous>, transform_indices = @transform_17, window_bounds = array<i64: 1, 32>}, {pipeline_mode = #tpu.pipeline_mode<synchronous>, transform_indices = @transform_18, window_bounds = array<i64: 32, 128>}, {pipeline_mode = #tpu.pipeline_mode<synchronous>, transform_indices = @transform_19, window_bounds = array<i64: 1, 128>}, {transform_indices = @transform_20, window_bounds = array<i64: 1, 1, 128>}]} {
    %c0 = arith.constant 0 : index
    %c0_0 = arith.constant 0 : index
    %c0_1 = arith.constant 0 : index
    %0 = vector.load %arg1[%c0, %c0_0, %c0_1] : memref<1x8x32xf32, #tpu.memory_space<vmem>>, vector<1x8x32xf32>
    %1 = vector.shape_cast %0 : vector<1x8x32xf32> to vector<8x32xf32>
    %c0_2 = arith.constant 0 : index
    %c0_3 = arith.constant 0 : index
    %c0_4 = arith.constant 0 : index
    %2 = vector.load %arg2[%c0_2, %c0_3, %c0_4] : memref<1x1x8xf32, #tpu.memory_space<vmem>>, vector<1x1x8xf32>
    %3 = vector.shape_cast %2 : vector<1x1x8xf32> to vector<1x8xf32>
    %c0_5 = arith.constant 0 : index
    %c0_6 = arith.constant 0 : index
    %4 = vector.load %arg3[%c0_5, %c0_6] : memref<1x32xf32, #tpu.memory_space<vmem>>, vector<1x32xf32>
    %c0_7 = arith.constant 0 : index
    %c0_8 = arith.constant 0 : index
    %5 = vector.load %arg4[%c0_7, %c0_8] : memref<1x32xf32, #tpu.memory_space<vmem>>, vector<1x32xf32>
    %cst = arith.constant dense<0.000000e+00> : vector<8xf32>
    %6 = vector.multi_reduction <add>, %1, %cst [1] : vector<8x32xf32> to vector<8xf32>
    %7 = vector.shape_cast %6 : vector<8xf32> to vector<8x1xf32>
    %cst_9 = arith.constant 3.200000e+01 : f32
    %8 = vector.broadcast %cst_9 : f32 to vector<8x1xf32>
    %9 = arith.divf %7, %8 : vector<8x1xf32>
    %10 = vector.broadcast %9 : vector<8x1xf32> to vector<8x32xf32>
    %11 = arith.subf %1, %10 : vector<8x32xf32>
    %12 = arith.mulf %11, %11 : vector<8x32xf32>
    %cst_10 = arith.constant dense<0.000000e+00> : vector<8xf32>
    %13 = vector.multi_reduction <add>, %12, %cst_10 [1] : vector<8x32xf32> to vector<8xf32>
    %14 = vector.shape_cast %13 : vector<8xf32> to vector<8x1xf32>
    %cst_11 = arith.constant 3.200000e+01 : f32
    %15 = vector.broadcast %cst_11 : f32 to vector<8x1xf32>
    %16 = arith.divf %14, %15 : vector<8x1xf32>
    %17 = vector.broadcast %9 : vector<8x1xf32> to vector<8x32xf32>
    %18 = arith.subf %1, %17 : vector<8x32xf32>
    %cst_12 = arith.constant 9.99999996E-13 : f32
    %19 = vector.broadcast %cst_12 : f32 to vector<8x1xf32>
    %20 = arith.addf %16, %19 : vector<8x1xf32>
    %21 = math.rsqrt %20 : vector<8x1xf32>
    %22 = vector.broadcast %21 : vector<8x1xf32> to vector<8x32xf32>
    %23 = arith.mulf %18, %22 : vector<8x32xf32>
    %24 = vector.broadcast %4 : vector<1x32xf32> to vector<8x32xf32>
    %25 = arith.mulf %23, %24 : vector<8x32xf32>
    %26 = vector.broadcast %5 : vector<1x32xf32> to vector<8x32xf32>
    %27 = arith.addf %25, %26 : vector<8x32xf32>
    %c0_13 = arith.constant 0 : index
    %c0_14 = arith.constant 0 : index
    %c0_15 = arith.constant 0 : index
    %28 = vector.load %arg5[%c0_13, %c0_14, %c0_15] : memref<2x32x96xf32, #tpu.memory_space<vmem>>, vector<1x32x96xf32>
    %29 = vector.shape_cast %28 : vector<1x32x96xf32> to vector<32x96xf32>
    %cst_16 = arith.constant dense<0.000000e+00> : vector<8x96xf32>
    %30 = tpu.matmul %27, %29, %cst_16 {dimension_numbers = #tpu.dot_dimension_numbers<[1], [0], [0], [1], [0, 0, 1, 1], [], []>} : vector<8x32xf32>, vector<32x96xf32>, vector<8x96xf32> -> vector<8x96xf32>
    %c0_17 = arith.constant 0 : index
    %c0_18 = arith.constant 0 : index
    %c0_19 = arith.constant 0 : index
    %31 = vector.load %arg6[%c0_17, %c0_18, %c0_19] : memref<2x1x96xf32, #tpu.memory_space<vmem>>, vector<1x1x96xf32>
    %32 = vector.shape_cast %31 : vector<1x1x96xf32> to vector<1x96xf32>
    %33 = vector.broadcast %32 : vector<1x96xf32> to vector<8x96xf32>
    %34 = arith.addf %30, %33 : vector<8x96xf32>
    %c0_20 = arith.constant 0 : index
    %c0_21 = arith.constant 0 : index
    %c0_22 = arith.constant 0 : index
    %35 = vector.load %arg7[%c0_20, %c0_21, %c0_22] : memref<2x32x32xf32, #tpu.memory_space<vmem>>, vector<1x32x32xf32>
    %36 = vector.shape_cast %35 : vector<1x32x32xf32> to vector<32x32xf32>
    %c0_23 = arith.constant 0 : index
    %c0_24 = arith.constant 0 : index
    %c0_25 = arith.constant 0 : index
    %37 = vector.load %arg8[%c0_23, %c0_24, %c0_25] : memref<2x1x32xf32, #tpu.memory_space<vmem>>, vector<1x1x32xf32>
    %38 = vector.shape_cast %37 : vector<1x1x32xf32> to vector<1x32xf32>
    %39 = vector.extract_strided_slice %34 {offsets = [0, 0], sizes = [8, 16], strides = [1, 1]} : vector<8x96xf32> to vector<8x16xf32>
    %40 = vector.extract_strided_slice %34 {offsets = [0, 32], sizes = [8, 16], strides = [1, 1]} : vector<8x96xf32> to vector<8x16xf32>
    %41 = vector.extract_strided_slice %34 {offsets = [0, 64], sizes = [8, 16], strides = [1, 1]} : vector<8x96xf32> to vector<8x16xf32>
    %cst_26 = arith.constant dense<0.000000e+00> : vector<8x8xf32>
    %42 = tpu.matmul %39, %40, %cst_26 {dimension_numbers = #tpu.dot_dimension_numbers<[1], [1], [0], [0], [0, 0, 1, 0], [], []>} : vector<8x16xf32>, vector<8x16xf32>, vector<8x8xf32> -> vector<8x8xf32>
    %cst_27 = arith.constant 2.500000e-01 : f32
    %43 = vector.broadcast %cst_27 : f32 to vector<8x8xf32>
    %44 = arith.mulf %42, %43 : vector<8x8xf32>
    %45 = vector.broadcast %3 : vector<1x8xf32> to vector<8x8xf32>
    %46 = arith.addf %44, %45 : vector<8x8xf32>
    %cst_28 = arith.constant dense<0xFF800000> : vector<8xf32>
    %47 = vector.multi_reduction <maximumf>, %46, %cst_28 [1] : vector<8x8xf32> to vector<8xf32>
    %48 = vector.shape_cast %47 : vector<8xf32> to vector<8x1xf32>
    %49 = vector.broadcast %48 : vector<8x1xf32> to vector<8x8xf32>
    %50 = arith.subf %46, %49 : vector<8x8xf32>
    %51 = math.exp %50 : vector<8x8xf32>
    %cst_29 = arith.constant dense<0.000000e+00> : vector<8xf32>
    %52 = vector.multi_reduction <add>, %51, %cst_29 [1] : vector<8x8xf32> to vector<8xf32>
    %53 = vector.shape_cast %52 : vector<8xf32> to vector<8x1xf32>
    %54 = tpu.reciprocal %53 {approx = true} : vector<8x1xf32> -> vector<8x1xf32>
    %55 = vector.broadcast %54 : vector<8x1xf32> to vector<8x8xf32>
    %56 = arith.mulf %51, %55 : vector<8x8xf32>
    %cst_30 = arith.constant dense<0.000000e+00> : vector<8x16xf32>
    %57 = tpu.matmul %56, %41, %cst_30 {dimension_numbers = #tpu.dot_dimension_numbers<[1], [0], [0], [1], [0, 0, 1, 1], [], []>} : vector<8x8xf32>, vector<8x16xf32>, vector<8x16xf32> -> vector<8x16xf32>
    %58 = vector.extract_strided_slice %36 {offsets = [0, 0], sizes = [16, 32], strides = [1, 1]} : vector<32x32xf32> to vector<16x32xf32>
    %cst_31 = arith.constant dense<0.000000e+00> : vector<8x32xf32>
    %59 = tpu.matmul %57, %58, %cst_31 {dimension_numbers = #tpu.dot_dimension_numbers<[1], [0], [0], [1], [0, 0, 1, 1], [], []>} : vector<8x16xf32>, vector<16x32xf32>, vector<8x32xf32> -> vector<8x32xf32>
    %60 = vector.broadcast %38 : vector<1x32xf32> to vector<8x32xf32>
    %61 = arith.addf %60, %59 : vector<8x32xf32>
    %62 = vector.extract_strided_slice %34 {offsets = [0, 16], sizes = [8, 16], strides = [1, 1]} : vector<8x96xf32> to vector<8x16xf32>
    %63 = vector.extract_strided_slice %34 {offsets = [0, 48], sizes = [8, 16], strides = [1, 1]} : vector<8x96xf32> to vector<8x16xf32>
    %64 = vector.extract_strided_slice %34 {offsets = [0, 80], sizes = [8, 16], strides = [1, 1]} : vector<8x96xf32> to vector<8x16xf32>
    %cst_32 = arith.constant dense<0.000000e+00> : vector<8x8xf32>
    %65 = tpu.matmul %62, %63, %cst_32 {dimension_numbers = #tpu.dot_dimension_numbers<[1], [1], [0], [0], [0, 0, 1, 0], [], []>} : vector<8x16xf32>, vector<8x16xf32>, vector<8x8xf32> -> vector<8x8xf32>
    %cst_33 = arith.constant 2.500000e-01 : f32
    %66 = vector.broadcast %cst_33 : f32 to vector<8x8xf32>
    %67 = arith.mulf %65, %66 : vector<8x8xf32>
    %68 = vector.broadcast %3 : vector<1x8xf32> to vector<8x8xf32>
    %69 = arith.addf %67, %68 : vector<8x8xf32>
    %cst_34 = arith.constant dense<0xFF800000> : vector<8xf32>
    %70 = vector.multi_reduction <maximumf>, %69, %cst_34 [1] : vector<8x8xf32> to vector<8xf32>
    %71 = vector.shape_cast %70 : vector<8xf32> to vector<8x1xf32>
    %72 = vector.broadcast %71 : vector<8x1xf32> to vector<8x8xf32>
    %73 = arith.subf %69, %72 : vector<8x8xf32>
    %74 = math.exp %73 : vector<8x8xf32>
    %cst_35 = arith.constant dense<0.000000e+00> : vector<8xf32>
    %75 = vector.multi_reduction <add>, %74, %cst_35 [1] : vector<8x8xf32> to vector<8xf32>
    %76 = vector.shape_cast %75 : vector<8xf32> to vector<8x1xf32>
    %77 = tpu.reciprocal %76 {approx = true} : vector<8x1xf32> -> vector<8x1xf32>
    %78 = vector.broadcast %77 : vector<8x1xf32> to vector<8x8xf32>
    %79 = arith.mulf %74, %78 : vector<8x8xf32>
    %cst_36 = arith.constant dense<0.000000e+00> : vector<8x16xf32>
    %80 = tpu.matmul %79, %64, %cst_36 {dimension_numbers = #tpu.dot_dimension_numbers<[1], [0], [0], [1], [0, 0, 1, 1], [], []>} : vector<8x8xf32>, vector<8x16xf32>, vector<8x16xf32> -> vector<8x16xf32>
    %81 = vector.extract_strided_slice %36 {offsets = [16, 0], sizes = [16, 32], strides = [1, 1]} : vector<32x32xf32> to vector<16x32xf32>
    %cst_37 = arith.constant dense<0.000000e+00> : vector<8x32xf32>
    %82 = tpu.matmul %80, %81, %cst_37 {dimension_numbers = #tpu.dot_dimension_numbers<[1], [0], [0], [1], [0, 0, 1, 1], [], []>} : vector<8x16xf32>, vector<16x32xf32>, vector<8x32xf32> -> vector<8x32xf32>
    %83 = arith.addf %61, %82 : vector<8x32xf32>
    %84 = arith.addf %27, %83 : vector<8x32xf32>
    %c0_38 = arith.constant 0 : index
    %c0_39 = arith.constant 0 : index
    %c0_40 = arith.constant 0 : index
    %85 = vector.load %arg9[%c0_38, %c0_39, %c0_40] : memref<2x1x32xf32, #tpu.memory_space<vmem>>, vector<1x1x32xf32>
    %86 = vector.shape_cast %85 : vector<1x1x32xf32> to vector<1x32xf32>
    %c0_41 = arith.constant 0 : index
    %c0_42 = arith.constant 0 : index
    %c0_43 = arith.constant 0 : index
    %87 = vector.load %arg10[%c0_41, %c0_42, %c0_43] : memref<2x1x32xf32, #tpu.memory_space<vmem>>, vector<1x1x32xf32>
    %88 = vector.shape_cast %87 : vector<1x1x32xf32> to vector<1x32xf32>
    %cst_44 = arith.constant dense<0.000000e+00> : vector<8xf32>
    %89 = vector.multi_reduction <add>, %84, %cst_44 [1] : vector<8x32xf32> to vector<8xf32>
    %90 = vector.shape_cast %89 : vector<8xf32> to vector<8x1xf32>
    %cst_45 = arith.constant 3.200000e+01 : f32
    %91 = vector.broadcast %cst_45 : f32 to vector<8x1xf32>
    %92 = arith.divf %90, %91 : vector<8x1xf32>
    %93 = vector.broadcast %92 : vector<8x1xf32> to vector<8x32xf32>
    %94 = arith.subf %84, %93 : vector<8x32xf32>
    %95 = arith.mulf %94, %94 : vector<8x32xf32>
    %cst_46 = arith.constant dense<0.000000e+00> : vector<8xf32>
    %96 = vector.multi_reduction <add>, %95, %cst_46 [1] : vector<8x32xf32> to vector<8xf32>
    %97 = vector.shape_cast %96 : vector<8xf32> to vector<8x1xf32>
    %cst_47 = arith.constant 3.200000e+01 : f32
    %98 = vector.broadcast %cst_47 : f32 to vector<8x1xf32>
    %99 = arith.divf %97, %98 : vector<8x1xf32>
    %100 = vector.broadcast %92 : vector<8x1xf32> to vector<8x32xf32>
    %101 = arith.subf %84, %100 : vector<8x32xf32>
    %cst_48 = arith.constant 9.99999996E-13 : f32
    %102 = vector.broadcast %cst_48 : f32 to vector<8x1xf32>
    %103 = arith.addf %99, %102 : vector<8x1xf32>
    %104 = math.rsqrt %103 : vector<8x1xf32>
    %105 = vector.broadcast %104 : vector<8x1xf32> to vector<8x32xf32>
    %106 = arith.mulf %101, %105 : vector<8x32xf32>
    %107 = vector.broadcast %86 : vector<1x32xf32> to vector<8x32xf32>
    %108 = arith.mulf %106, %107 : vector<8x32xf32>
    %109 = vector.broadcast %88 : vector<1x32xf32> to vector<8x32xf32>
    %110 = arith.addf %108, %109 : vector<8x32xf32>
    %c0_49 = arith.constant 0 : index
    %c0_50 = arith.constant 0 : index
    %c0_51 = arith.constant 0 : index
    %111 = vector.load %arg11[%c0_49, %c0_50, %c0_51] : memref<2x32x64xf32, #tpu.memory_space<vmem>>, vector<1x32x64xf32>
    %112 = vector.shape_cast %111 : vector<1x32x64xf32> to vector<32x64xf32>
    %cst_52 = arith.constant dense<0.000000e+00> : vector<8x64xf32>
    %113 = tpu.matmul %110, %112, %cst_52 {dimension_numbers = #tpu.dot_dimension_numbers<[1], [0], [0], [1], [0, 0, 1, 1], [], []>} : vector<8x32xf32>, vector<32x64xf32>, vector<8x64xf32> -> vector<8x64xf32>
    %c0_53 = arith.constant 0 : index
    %c0_54 = arith.constant 0 : index
    %c0_55 = arith.constant 0 : index
    %114 = vector.load %arg12[%c0_53, %c0_54, %c0_55] : memref<2x1x64xf32, #tpu.memory_space<vmem>>, vector<1x1x64xf32>
    %115 = vector.shape_cast %114 : vector<1x1x64xf32> to vector<1x64xf32>
    %116 = vector.broadcast %115 : vector<1x64xf32> to vector<8x64xf32>
    %117 = arith.addf %113, %116 : vector<8x64xf32>
    %118 = arith.mulf %117, %117 : vector<8x64xf32>
    %119 = arith.mulf %117, %118 : vector<8x64xf32>
    %cst_56 = arith.constant 4.471500e-02 : f32
    %120 = vector.broadcast %cst_56 : f32 to vector<8x64xf32>
    %121 = arith.mulf %120, %119 : vector<8x64xf32>
    %122 = arith.addf %117, %121 : vector<8x64xf32>
    %cst_57 = arith.constant 0.797884583 : f32
    %123 = vector.broadcast %cst_57 : f32 to vector<8x64xf32>
    %124 = arith.mulf %123, %122 : vector<8x64xf32>
    %125 = math.tanh %124 : vector<8x64xf32>
    %cst_58 = arith.constant 1.000000e+00 : f32
    %126 = vector.broadcast %cst_58 : f32 to vector<8x64xf32>
    %127 = arith.addf %126, %125 : vector<8x64xf32>
    %cst_59 = arith.constant 5.000000e-01 : f32
    %128 = vector.broadcast %cst_59 : f32 to vector<8x64xf32>
    %129 = arith.mulf %128, %127 : vector<8x64xf32>
    %130 = arith.mulf %117, %129 : vector<8x64xf32>
    %c0_60 = arith.constant 0 : index
    %c0_61 = arith.constant 0 : index
    %c0_62 = arith.constant 0 : index
    %131 = vector.load %arg13[%c0_60, %c0_61, %c0_62] : memref<2x64x32xf32, #tpu.memory_space<vmem>>, vector<1x64x32xf32>
    %132 = vector.shape_cast %131 : vector<1x64x32xf32> to vector<64x32xf32>
    %cst_63 = arith.constant dense<0.000000e+00> : vector<8x32xf32>
    %133 = tpu.matmul %130, %132, %cst_63 {dimension_numbers = #tpu.dot_dimension_numbers<[1], [0], [0], [1], [0, 0, 1, 1], [], []>} : vector<8x64xf32>, vector<64x32xf32>, vector<8x32xf32> -> vector<8x32xf32>
    %c0_64 = arith.constant 0 : index
    %c0_65 = arith.constant 0 : index
    %c0_66 = arith.constant 0 : index
    %134 = vector.load %arg14[%c0_64, %c0_65, %c0_66] : memref<2x1x32xf32, #tpu.memory_space<vmem>>, vector<1x1x32xf32>
    %135 = vector.shape_cast %134 : vector<1x1x32xf32> to vector<1x32xf32>
    %136 = vector.broadcast %135 : vector<1x32xf32> to vector<8x32xf32>
    %137 = arith.addf %133, %136 : vector<8x32xf32>
    %138 = arith.addf %110, %137 : vector<8x32xf32>
    %c0_67 = arith.constant 0 : index
    %c0_68 = arith.constant 0 : index
    %c0_69 = arith.constant 0 : index
    %139 = vector.load %arg15[%c0_67, %c0_68, %c0_69] : memref<2x1x32xf32, #tpu.memory_space<vmem>>, vector<1x1x32xf32>
    %140 = vector.shape_cast %139 : vector<1x1x32xf32> to vector<1x32xf32>
    %c0_70 = arith.constant 0 : index
    %c0_71 = arith.constant 0 : index
    %c0_72 = arith.constant 0 : index
    %141 = vector.load %arg16[%c0_70, %c0_71, %c0_72] : memref<2x1x32xf32, #tpu.memory_space<vmem>>, vector<1x1x32xf32>
    %142 = vector.shape_cast %141 : vector<1x1x32xf32> to vector<1x32xf32>
    %cst_73 = arith.constant dense<0.000000e+00> : vector<8xf32>
    %143 = vector.multi_reduction <add>, %138, %cst_73 [1] : vector<8x32xf32> to vector<8xf32>
    %144 = vector.shape_cast %143 : vector<8xf32> to vector<8x1xf32>
    %cst_74 = arith.constant 3.200000e+01 : f32
    %145 = vector.broadcast %cst_74 : f32 to vector<8x1xf32>
    %146 = arith.divf %144, %145 : vector<8x1xf32>
    %147 = vector.broadcast %146 : vector<8x1xf32> to vector<8x32xf32>
    %148 = arith.subf %138, %147 : vector<8x32xf32>
    %149 = arith.mulf %148, %148 : vector<8x32xf32>
    %cst_75 = arith.constant dense<0.000000e+00> : vector<8xf32>
    %150 = vector.multi_reduction <add>, %149, %cst_75 [1] : vector<8x32xf32> to vector<8xf32>
    %151 = vector.shape_cast %150 : vector<8xf32> to vector<8x1xf32>
    %cst_76 = arith.constant 3.200000e+01 : f32
    %152 = vector.broadcast %cst_76 : f32 to vector<8x1xf32>
    %153 = arith.divf %151, %152 : vector<8x1xf32>
    %154 = vector.broadcast %146 : vector<8x1xf32> to vector<8x32xf32>
    %155 = arith.subf %138, %154 : vector<8x32xf32>
    %cst_77 = arith.constant 9.99999996E-13 : f32
    %156 = vector.broadcast %cst_77 : f32 to vector<8x1xf32>
    %157 = arith.addf %153, %156 : vector<8x1xf32>
    %158 = math.rsqrt %157 : vector<8x1xf32>
    %159 = vector.broadcast %158 : vector<8x1xf32> to vector<8x32xf32>
    %160 = arith.mulf %155, %159 : vector<8x32xf32>
    %161 = vector.broadcast %140 : vector<1x32xf32> to vector<8x32xf32>
    %162 = arith.mulf %160, %161 : vector<8x32xf32>
    %163 = vector.broadcast %142 : vector<1x32xf32> to vector<8x32xf32>
    %164 = arith.addf %162, %163 : vector<8x32xf32>
    %c1 = arith.constant 1 : index
    %c0_78 = arith.constant 0 : index
    %c0_79 = arith.constant 0 : index
    %165 = vector.load %arg5[%c1, %c0_78, %c0_79] : memref<2x32x96xf32, #tpu.memory_space<vmem>>, vector<1x32x96xf32>
    %166 = vector.shape_cast %165 : vector<1x32x96xf32> to vector<32x96xf32>
    %cst_80 = arith.constant dense<0.000000e+00> : vector<8x96xf32>
    %167 = tpu.matmul %164, %166, %cst_80 {dimension_numbers = #tpu.dot_dimension_numbers<[1], [0], [0], [1], [0, 0, 1, 1], [], []>} : vector<8x32xf32>, vector<32x96xf32>, vector<8x96xf32> -> vector<8x96xf32>
    %c1_81 = arith.constant 1 : index
    %c0_82 = arith.constant 0 : index
    %c0_83 = arith.constant 0 : index
    %168 = vector.load %arg6[%c1_81, %c0_82, %c0_83] : memref<2x1x96xf32, #tpu.memory_space<vmem>>, vector<1x1x96xf32>
    %169 = vector.shape_cast %168 : vector<1x1x96xf32> to vector<1x96xf32>
    %170 = vector.broadcast %169 : vector<1x96xf32> to vector<8x96xf32>
    %171 = arith.addf %167, %170 : vector<8x96xf32>
    %c1_84 = arith.constant 1 : index
    %c0_85 = arith.constant 0 : index
    %c0_86 = arith.constant 0 : index
    %172 = vector.load %arg7[%c1_84, %c0_85, %c0_86] : memref<2x32x32xf32, #tpu.memory_space<vmem>>, vector<1x32x32xf32>
    %173 = vector.shape_cast %172 : vector<1x32x32xf32> to vector<32x32xf32>
    %c1_87 = arith.constant 1 : index
    %c0_88 = arith.constant 0 : index
    %c0_89 = arith.constant 0 : index
    %174 = vector.load %arg8[%c1_87, %c0_88, %c0_89] : memref<2x1x32xf32, #tpu.memory_space<vmem>>, vector<1x1x32xf32>
    %175 = vector.shape_cast %174 : vector<1x1x32xf32> to vector<1x32xf32>
    %176 = vector.extract_strided_slice %171 {offsets = [0, 0], sizes = [8, 16], strides = [1, 1]} : vector<8x96xf32> to vector<8x16xf32>
    %177 = vector.extract_strided_slice %171 {offsets = [0, 32], sizes = [8, 16], strides = [1, 1]} : vector<8x96xf32> to vector<8x16xf32>
    %178 = vector.extract_strided_slice %171 {offsets = [0, 64], sizes = [8, 16], strides = [1, 1]} : vector<8x96xf32> to vector<8x16xf32>
    %cst_90 = arith.constant dense<0.000000e+00> : vector<8x8xf32>
    %179 = tpu.matmul %176, %177, %cst_90 {dimension_numbers = #tpu.dot_dimension_numbers<[1], [1], [0], [0], [0, 0, 1, 0], [], []>} : vector<8x16xf32>, vector<8x16xf32>, vector<8x8xf32> -> vector<8x8xf32>
    %cst_91 = arith.constant 2.500000e-01 : f32
    %180 = vector.broadcast %cst_91 : f32 to vector<8x8xf32>
    %181 = arith.mulf %179, %180 : vector<8x8xf32>
    %182 = vector.broadcast %3 : vector<1x8xf32> to vector<8x8xf32>
    %183 = arith.addf %181, %182 : vector<8x8xf32>
    %cst_92 = arith.constant dense<0xFF800000> : vector<8xf32>
    %184 = vector.multi_reduction <maximumf>, %183, %cst_92 [1] : vector<8x8xf32> to vector<8xf32>
    %185 = vector.shape_cast %184 : vector<8xf32> to vector<8x1xf32>
    %186 = vector.broadcast %185 : vector<8x1xf32> to vector<8x8xf32>
    %187 = arith.subf %183, %186 : vector<8x8xf32>
    %188 = math.exp %187 : vector<8x8xf32>
    %cst_93 = arith.constant dense<0.000000e+00> : vector<8xf32>
    %189 = vector.multi_reduction <add>, %188, %cst_93 [1] : vector<8x8xf32> to vector<8xf32>
    %190 = vector.shape_cast %189 : vector<8xf32> to vector<8x1xf32>
    %191 = tpu.reciprocal %190 {approx = true} : vector<8x1xf32> -> vector<8x1xf32>
    %192 = vector.broadcast %191 : vector<8x1xf32> to vector<8x8xf32>
    %193 = arith.mulf %188, %192 : vector<8x8xf32>
    %cst_94 = arith.constant dense<0.000000e+00> : vector<8x16xf32>
    %194 = tpu.matmul %193, %178, %cst_94 {dimension_numbers = #tpu.dot_dimension_numbers<[1], [0], [0], [1], [0, 0, 1, 1], [], []>} : vector<8x8xf32>, vector<8x16xf32>, vector<8x16xf32> -> vector<8x16xf32>
    %195 = vector.extract_strided_slice %173 {offsets = [0, 0], sizes = [16, 32], strides = [1, 1]} : vector<32x32xf32> to vector<16x32xf32>
    %cst_95 = arith.constant dense<0.000000e+00> : vector<8x32xf32>
    %196 = tpu.matmul %194, %195, %cst_95 {dimension_numbers = #tpu.dot_dimension_numbers<[1], [0], [0], [1], [0, 0, 1, 1], [], []>} : vector<8x16xf32>, vector<16x32xf32>, vector<8x32xf32> -> vector<8x32xf32>
    %197 = vector.broadcast %175 : vector<1x32xf32> to vector<8x32xf32>
    %198 = arith.addf %197, %196 : vector<8x32xf32>
    %199 = vector.extract_strided_slice %171 {offsets = [0, 16], sizes = [8, 16], strides = [1, 1]} : vector<8x96xf32> to vector<8x16xf32>
    %200 = vector.extract_strided_slice %171 {offsets = [0, 48], sizes = [8, 16], strides = [1, 1]} : vector<8x96xf32> to vector<8x16xf32>
    %201 = vector.extract_strided_slice %171 {offsets = [0, 80], sizes = [8, 16], strides = [1, 1]} : vector<8x96xf32> to vector<8x16xf32>
    %cst_96 = arith.constant dense<0.000000e+00> : vector<8x8xf32>
    %202 = tpu.matmul %199, %200, %cst_96 {dimension_numbers = #tpu.dot_dimension_numbers<[1], [1], [0], [0], [0, 0, 1, 0], [], []>} : vector<8x16xf32>, vector<8x16xf32>, vector<8x8xf32> -> vector<8x8xf32>
    %cst_97 = arith.constant 2.500000e-01 : f32
    %203 = vector.broadcast %cst_97 : f32 to vector<8x8xf32>
    %204 = arith.mulf %202, %203 : vector<8x8xf32>
    %205 = vector.broadcast %3 : vector<1x8xf32> to vector<8x8xf32>
    %206 = arith.addf %204, %205 : vector<8x8xf32>
    %cst_98 = arith.constant dense<0xFF800000> : vector<8xf32>
    %207 = vector.multi_reduction <maximumf>, %206, %cst_98 [1] : vector<8x8xf32> to vector<8xf32>
    %208 = vector.shape_cast %207 : vector<8xf32> to vector<8x1xf32>
    %209 = vector.broadcast %208 : vector<8x1xf32> to vector<8x8xf32>
    %210 = arith.subf %206, %209 : vector<8x8xf32>
    %211 = math.exp %210 : vector<8x8xf32>
    %cst_99 = arith.constant dense<0.000000e+00> : vector<8xf32>
    %212 = vector.multi_reduction <add>, %211, %cst_99 [1] : vector<8x8xf32> to vector<8xf32>
    %213 = vector.shape_cast %212 : vector<8xf32> to vector<8x1xf32>
    %214 = tpu.reciprocal %213 {approx = true} : vector<8x1xf32> -> vector<8x1xf32>
    %215 = vector.broadcast %214 : vector<8x1xf32> to vector<8x8xf32>
    %216 = arith.mulf %211, %215 : vector<8x8xf32>
    %cst_100 = arith.constant dense<0.000000e+00> : vector<8x16xf32>
    %217 = tpu.matmul %216, %201, %cst_100 {dimension_numbers = #tpu.dot_dimension_numbers<[1], [0], [0], [1], [0, 0, 1, 1], [], []>} : vector<8x8xf32>, vector<8x16xf32>, vector<8x16xf32> -> vector<8x16xf32>
    %218 = vector.extract_strided_slice %173 {offsets = [16, 0], sizes = [16, 32], strides = [1, 1]} : vector<32x32xf32> to vector<16x32xf32>
    %cst_101 = arith.constant dense<0.000000e+00> : vector<8x32xf32>
    %219 = tpu.matmul %217, %218, %cst_101 {dimension_numbers = #tpu.dot_dimension_numbers<[1], [0], [0], [1], [0, 0, 1, 1], [], []>} : vector<8x16xf32>, vector<16x32xf32>, vector<8x32xf32> -> vector<8x32xf32>
    %220 = arith.addf %198, %219 : vector<8x32xf32>
    %221 = arith.addf %164, %220 : vector<8x32xf32>
    %c1_102 = arith.constant 1 : index
    %c0_103 = arith.constant 0 : index
    %c0_104 = arith.constant 0 : index
    %222 = vector.load %arg9[%c1_102, %c0_103, %c0_104] : memref<2x1x32xf32, #tpu.memory_space<vmem>>, vector<1x1x32xf32>
    %223 = vector.shape_cast %222 : vector<1x1x32xf32> to vector<1x32xf32>
    %c1_105 = arith.constant 1 : index
    %c0_106 = arith.constant 0 : index
    %c0_107 = arith.constant 0 : index
    %224 = vector.load %arg10[%c1_105, %c0_106, %c0_107] : memref<2x1x32xf32, #tpu.memory_space<vmem>>, vector<1x1x32xf32>
    %225 = vector.shape_cast %224 : vector<1x1x32xf32> to vector<1x32xf32>
    %cst_108 = arith.constant dense<0.000000e+00> : vector<8xf32>
    %226 = vector.multi_reduction <add>, %221, %cst_108 [1] : vector<8x32xf32> to vector<8xf32>
    %227 = vector.shape_cast %226 : vector<8xf32> to vector<8x1xf32>
    %cst_109 = arith.constant 3.200000e+01 : f32
    %228 = vector.broadcast %cst_109 : f32 to vector<8x1xf32>
    %229 = arith.divf %227, %228 : vector<8x1xf32>
    %230 = vector.broadcast %229 : vector<8x1xf32> to vector<8x32xf32>
    %231 = arith.subf %221, %230 : vector<8x32xf32>
    %232 = arith.mulf %231, %231 : vector<8x32xf32>
    %cst_110 = arith.constant dense<0.000000e+00> : vector<8xf32>
    %233 = vector.multi_reduction <add>, %232, %cst_110 [1] : vector<8x32xf32> to vector<8xf32>
    %234 = vector.shape_cast %233 : vector<8xf32> to vector<8x1xf32>
    %cst_111 = arith.constant 3.200000e+01 : f32
    %235 = vector.broadcast %cst_111 : f32 to vector<8x1xf32>
    %236 = arith.divf %234, %235 : vector<8x1xf32>
    %237 = vector.broadcast %229 : vector<8x1xf32> to vector<8x32xf32>
    %238 = arith.subf %221, %237 : vector<8x32xf32>
    %cst_112 = arith.constant 9.99999996E-13 : f32
    %239 = vector.broadcast %cst_112 : f32 to vector<8x1xf32>
    %240 = arith.addf %236, %239 : vector<8x1xf32>
    %241 = math.rsqrt %240 : vector<8x1xf32>
    %242 = vector.broadcast %241 : vector<8x1xf32> to vector<8x32xf32>
    %243 = arith.mulf %238, %242 : vector<8x32xf32>
    %244 = vector.broadcast %223 : vector<1x32xf32> to vector<8x32xf32>
    %245 = arith.mulf %243, %244 : vector<8x32xf32>
    %246 = vector.broadcast %225 : vector<1x32xf32> to vector<8x32xf32>
    %247 = arith.addf %245, %246 : vector<8x32xf32>
    %c1_113 = arith.constant 1 : index
    %c0_114 = arith.constant 0 : index
    %c0_115 = arith.constant 0 : index
    %248 = vector.load %arg11[%c1_113, %c0_114, %c0_115] : memref<2x32x64xf32, #tpu.memory_space<vmem>>, vector<1x32x64xf32>
    %249 = vector.shape_cast %248 : vector<1x32x64xf32> to vector<32x64xf32>
    %cst_116 = arith.constant dense<0.000000e+00> : vector<8x64xf32>
    %250 = tpu.matmul %247, %249, %cst_116 {dimension_numbers = #tpu.dot_dimension_numbers<[1], [0], [0], [1], [0, 0, 1, 1], [], []>} : vector<8x32xf32>, vector<32x64xf32>, vector<8x64xf32> -> vector<8x64xf32>
    %c1_117 = arith.constant 1 : index
    %c0_118 = arith.constant 0 : index
    %c0_119 = arith.constant 0 : index
    %251 = vector.load %arg12[%c1_117, %c0_118, %c0_119] : memref<2x1x64xf32, #tpu.memory_space<vmem>>, vector<1x1x64xf32>
    %252 = vector.shape_cast %251 : vector<1x1x64xf32> to vector<1x64xf32>
    %253 = vector.broadcast %252 : vector<1x64xf32> to vector<8x64xf32>
    %254 = arith.addf %250, %253 : vector<8x64xf32>
    %255 = arith.mulf %254, %254 : vector<8x64xf32>
    %256 = arith.mulf %254, %255 : vector<8x64xf32>
    %cst_120 = arith.constant 4.471500e-02 : f32
    %257 = vector.broadcast %cst_120 : f32 to vector<8x64xf32>
    %258 = arith.mulf %257, %256 : vector<8x64xf32>
    %259 = arith.addf %254, %258 : vector<8x64xf32>
    %cst_121 = arith.constant 0.797884583 : f32
    %260 = vector.broadcast %cst_121 : f32 to vector<8x64xf32>
    %261 = arith.mulf %260, %259 : vector<8x64xf32>
    %262 = math.tanh %261 : vector<8x64xf32>
    %cst_122 = arith.constant 1.000000e+00 : f32
    %263 = vector.broadcast %cst_122 : f32 to vector<8x64xf32>
    %264 = arith.addf %263, %262 : vector<8x64xf32>
    %cst_123 = arith.constant 5.000000e-01 : f32
    %265 = vector.broadcast %cst_123 : f32 to vector<8x64xf32>
    %266 = arith.mulf %265, %264 : vector<8x64xf32>
    %267 = arith.mulf %254, %266 : vector<8x64xf32>
    %c1_124 = arith.constant 1 : index
    %c0_125 = arith.constant 0 : index
    %c0_126 = arith.constant 0 : index
    %268 = vector.load %arg13[%c1_124, %c0_125, %c0_126] : memref<2x64x32xf32, #tpu.memory_space<vmem>>, vector<1x64x32xf32>
    %269 = vector.shape_cast %268 : vector<1x64x32xf32> to vector<64x32xf32>
    %cst_127 = arith.constant dense<0.000000e+00> : vector<8x32xf32>
    %270 = tpu.matmul %267, %269, %cst_127 {dimension_numbers = #tpu.dot_dimension_numbers<[1], [0], [0], [1], [0, 0, 1, 1], [], []>} : vector<8x64xf32>, vector<64x32xf32>, vector<8x32xf32> -> vector<8x32xf32>
    %c1_128 = arith.constant 1 : index
    %c0_129 = arith.constant 0 : index
    %c0_130 = arith.constant 0 : index
    %271 = vector.load %arg14[%c1_128, %c0_129, %c0_130] : memref<2x1x32xf32, #tpu.memory_space<vmem>>, vector<1x1x32xf32>
    %272 = vector.shape_cast %271 : vector<1x1x32xf32> to vector<1x32xf32>
    %273 = vector.broadcast %272 : vector<1x32xf32> to vector<8x32xf32>
    %274 = arith.addf %270, %273 : vector<8x32xf32>
    %275 = arith.addf %247, %274 : vector<8x32xf32>
    %c1_131 = arith.constant 1 : index
    %c0_132 = arith.constant 0 : index
    %c0_133 = arith.constant 0 : index
    %276 = vector.load %arg15[%c1_131, %c0_132, %c0_133] : memref<2x1x32xf32, #tpu.memory_space<vmem>>, vector<1x1x32xf32>
    %277 = vector.shape_cast %276 : vector<1x1x32xf32> to vector<1x32xf32>
    %c1_134 = arith.constant 1 : index
    %c0_135 = arith.constant 0 : index
    %c0_136 = arith.constant 0 : index
    %278 = vector.load %arg16[%c1_134, %c0_135, %c0_136] : memref<2x1x32xf32, #tpu.memory_space<vmem>>, vector<1x1x32xf32>
    %279 = vector.shape_cast %278 : vector<1x1x32xf32> to vector<1x32xf32>
    %cst_137 = arith.constant dense<0.000000e+00> : vector<8xf32>
    %280 = vector.multi_reduction <add>, %275, %cst_137 [1] : vector<8x32xf32> to vector<8xf32>
    %281 = vector.shape_cast %280 : vector<8xf32> to vector<8x1xf32>
    %cst_138 = arith.constant 3.200000e+01 : f32
    %282 = vector.broadcast %cst_138 : f32 to vector<8x1xf32>
    %283 = arith.divf %281, %282 : vector<8x1xf32>
    %284 = vector.broadcast %283 : vector<8x1xf32> to vector<8x32xf32>
    %285 = arith.subf %275, %284 : vector<8x32xf32>
    %286 = arith.mulf %285, %285 : vector<8x32xf32>
    %cst_139 = arith.constant dense<0.000000e+00> : vector<8xf32>
    %287 = vector.multi_reduction <add>, %286, %cst_139 [1] : vector<8x32xf32> to vector<8xf32>
    %288 = vector.shape_cast %287 : vector<8xf32> to vector<8x1xf32>
    %cst_140 = arith.constant 3.200000e+01 : f32
    %289 = vector.broadcast %cst_140 : f32 to vector<8x1xf32>
    %290 = arith.divf %288, %289 : vector<8x1xf32>
    %291 = vector.broadcast %283 : vector<8x1xf32> to vector<8x32xf32>
    %292 = arith.subf %275, %291 : vector<8x32xf32>
    %cst_141 = arith.constant 9.99999996E-13 : f32
    %293 = vector.broadcast %cst_141 : f32 to vector<8x1xf32>
    %294 = arith.addf %290, %293 : vector<8x1xf32>
    %295 = math.rsqrt %294 : vector<8x1xf32>
    %296 = vector.broadcast %295 : vector<8x1xf32> to vector<8x32xf32>
    %297 = arith.mulf %292, %296 : vector<8x32xf32>
    %298 = vector.broadcast %277 : vector<1x32xf32> to vector<8x32xf32>
    %299 = arith.mulf %297, %298 : vector<8x32xf32>
    %300 = vector.broadcast %279 : vector<1x32xf32> to vector<8x32xf32>
    %301 = arith.addf %299, %300 : vector<8x32xf32>
    %302 = vector.extract_strided_slice %301 {offsets = [0, 0], sizes = [1, 32], strides = [1, 1]} : vector<8x32xf32> to vector<1x32xf32>
    %c0_142 = arith.constant 0 : index
    %c0_143 = arith.constant 0 : index
    %303 = vector.load %arg17[%c0_142, %c0_143] : memref<32x32xf32, #tpu.memory_space<vmem>>, vector<32x32xf32>
    %cst_144 = arith.constant dense<0.000000e+00> : vector<1x32xf32>
    %304 = tpu.matmul %302, %303, %cst_144 {dimension_numbers = #tpu.dot_dimension_numbers<[1], [0], [0], [1], [0, 0, 1, 1], [], []>} : vector<1x32xf32>, vector<32x32xf32>, vector<1x32xf32> -> vector<1x32xf32>
    %c0_145 = arith.constant 0 : index
    %c0_146 = arith.constant 0 : index
    %305 = vector.load %arg18[%c0_145, %c0_146] : memref<1x32xf32, #tpu.memory_space<vmem>>, vector<1x32xf32>
    %306 = arith.addf %304, %305 : vector<1x32xf32>
    %c0_147 = arith.constant 0 : index
    %c0_148 = arith.constant 0 : index
    %307 = vector.load %arg19[%c0_147, %c0_148] : memref<32x128xf32, #tpu.memory_space<vmem>>, vector<32x128xf32>
    %cst_149 = arith.constant dense<0.000000e+00> : vector<1x128xf32>
    %308 = tpu.matmul %306, %307, %cst_149 {dimension_numbers = #tpu.dot_dimension_numbers<[1], [0], [0], [1], [0, 0, 1, 1], [], []>} : vector<1x32xf32>, vector<32x128xf32>, vector<1x128xf32> -> vector<1x128xf32>
    %c0_150 = arith.constant 0 : index
    %c0_151 = arith.constant 0 : index
    %309 = vector.load %arg20[%c0_150, %c0_151] : memref<1x128xf32, #tpu.memory_space<vmem>>, vector<1x128xf32>
    %310 = arith.addf %308, %309 : vector<1x128xf32>
    %c0_152 = arith.constant 0 : index
    %c0_153 = arith.constant 0 : index
    %c0_154 = arith.constant 0 : index
    %311 = vector.load %arg21[%c0_152, %c0_153, %c0_154] : memref<1x1x128xf32, #tpu.memory_space<vmem>>, vector<1x1x128xf32>
    %312 = vector.shape_cast %311 : vector<1x1x128xf32> to vector<1x128xf32>
    %313 = vector.shape_cast %310 : vector<1x128xf32> to vector<1x1x128xf32>
    tpu.vector_store %arg21[%c0_152, %c0_153, %c0_154], %313 {strides = array<i32>} : memref<1x1x128xf32, #tpu.memory_space<vmem>>, vector<1x1x128xf32>,
    return
  }
  func.func @transform_0(%arg0: i32) -> (i32, i32, i32) {
    %c0_i32 = arith.constant 0 : i32
    %c0_i32_0 = arith.constant 0 : i32
    %c0_i32_1 = arith.constant 0 : i32
    return %arg0, %c0_i32, %c0_i32_0 : i32, i32, i32
  }
  func.func @transform_1(%arg0: i32) -> (i32, i32, i32) {
    %c0_i32 = arith.constant 0 : i32
    %c0_i32_0 = arith.constant 0 : i32
    %c0_i32_1 = arith.constant 0 : i32
    return %arg0, %c0_i32, %c0_i32_0 : i32, i32, i32
  }
  func.func @transform_2(%arg0: i32) -> (i32, i32) {
    %c0_i32 = arith.constant 0 : i32
    %c0_i32_0 = arith.constant 0 : i32
    %c0_i32_1 = arith.constant 0 : i32
    return %c0_i32, %c0_i32_0 : i32, i32
  }
  func.func @transform_3(%arg0: i32) -> (i32, i32) {
    %c0_i32 = arith.constant 0 : i32
    %c0_i32_0 = arith.constant 0 : i32
    %c0_i32_1 = arith.constant 0 : i32
    return %c0_i32, %c0_i32_0 : i32, i32
  }
  func.func @transform_4(%arg0: i32) -> (i32, i32, i32) {
    %c0_i32 = arith.constant 0 : i32
    %c0_i32_0 = arith.constant 0 : i32
    %c0_i32_1 = arith.constant 0 : i32
    %c0_i32_2 = arith.constant 0 : i32
    return %c0_i32, %c0_i32_0, %c0_i32_1 : i32, i32, i32
  }
  func.func @transform_5(%arg0: i32) -> (i32, i32, i32) {
    %c0_i32 = arith.constant 0 : i32
    %c0_i32_0 = arith.constant 0 : i32
    %c0_i32_1 = arith.constant 0 : i32
    %c0_i32_2 = arith.constant 0 : i32
    return %c0_i32, %c0_i32_0, %c0_i32_1 : i32, i32, i32
  }
  func.func @transform_6(%arg0: i32) -> (i32, i32, i32) {
    %c0_i32 = arith.constant 0 : i32
    %c0_i32_0 = arith.constant 0 : i32
    %c0_i32_1 = arith.constant 0 : i32
    %c0_i32_2 = arith.constant 0 : i32
    return %c0_i32, %c0_i32_0, %c0_i32_1 : i32, i32, i32
  }
  func.func @transform_7(%arg0: i32) -> (i32, i32, i32) {
    %c0_i32 = arith.constant 0 : i32
    %c0_i32_0 = arith.constant 0 : i32
    %c0_i32_1 = arith.constant 0 : i32
    %c0_i32_2 = arith.constant 0 : i32
    return %c0_i32, %c0_i32_0, %c0_i32_1 : i32, i32, i32
  }
  func.func @transform_8(%arg0: i32) -> (i32, i32, i32) {
    %c0_i32 = arith.constant 0 : i32
    %c0_i32_0 = arith.constant 0 : i32
    %c0_i32_1 = arith.constant 0 : i32
    %c0_i32_2 = arith.constant 0 : i32
    return %c0_i32, %c0_i32_0, %c0_i32_1 : i32, i32, i32
  }
  func.func @transform_9(%arg0: i32) -> (i32, i32, i32) {
    %c0_i32 = arith.constant 0 : i32
    %c0_i32_0 = arith.constant 0 : i32
    %c0_i32_1 = arith.constant 0 : i32
    %c0_i32_2 = arith.constant 0 : i32
    return %c0_i32, %c0_i32_0, %c0_i32_1 : i32, i32, i32
  }
  func.func @transform_10(%arg0: i32) -> (i32, i32, i32) {
    %c0_i32 = arith.constant 0 : i32
    %c0_i32_0 = arith.constant 0 : i32
    %c0_i32_1 = arith.constant 0 : i32
    %c0_i32_2 = arith.constant 0 : i32
    return %c0_i32, %c0_i32_0, %c0_i32_1 : i32, i32, i32
  }
  func.func @transform_11(%arg0: i32) -> (i32, i32, i32) {
    %c0_i32 = arith.constant 0 : i32
    %c0_i32_0 = arith.constant 0 : i32
    %c0_i32_1 = arith.constant 0 : i32
    %c0_i32_2 = arith.constant 0 : i32
    return %c0_i32, %c0_i32_0, %c0_i32_1 : i32, i32, i32
  }
  func.func @transform_12(%arg0: i32) -> (i32, i32, i32) {
    %c0_i32 = arith.constant 0 : i32
    %c0_i32_0 = arith.constant 0 : i32
    %c0_i32_1 = arith.constant 0 : i32
    %c0_i32_2 = arith.constant 0 : i32
    return %c0_i32, %c0_i32_0, %c0_i32_1 : i32, i32, i32
  }
  func.func @transform_13(%arg0: i32) -> (i32, i32, i32) {
    %c0_i32 = arith.constant 0 : i32
    %c0_i32_0 = arith.constant 0 : i32
    %c0_i32_1 = arith.constant 0 : i32
    %c0_i32_2 = arith.constant 0 : i32
    return %c0_i32, %c0_i32_0, %c0_i32_1 : i32, i32, i32
  }
  func.func @transform_14(%arg0: i32) -> (i32, i32, i32) {
    %c0_i32 = arith.constant 0 : i32
    %c0_i32_0 = arith.constant 0 : i32
    %c0_i32_1 = arith.constant 0 : i32
    %c0_i32_2 = arith.constant 0 : i32
    return %c0_i32, %c0_i32_0, %c0_i32_1 : i32, i32, i32
  }
  func.func @transform_15(%arg0: i32) -> (i32, i32, i32) {
    %c0_i32 = arith.constant 0 : i32
    %c0_i32_0 = arith.constant 0 : i32
    %c0_i32_1 = arith.constant 0 : i32
    %c0_i32_2 = arith.constant 0 : i32
    return %c0_i32, %c0_i32_0, %c0_i32_1 : i32, i32, i32
  }
  func.func @transform_16(%arg0: i32) -> (i32, i32) {
    %c0_i32 = arith.constant 0 : i32
    %c0_i32_0 = arith.constant 0 : i32
    %c0_i32_1 = arith.constant 0 : i32
    return %c0_i32, %c0_i32_0 : i32, i32
  }
  func.func @transform_17(%arg0: i32) -> (i32, i32) {
    %c0_i32 = arith.constant 0 : i32
    %c0_i32_0 = arith.constant 0 : i32
    %c0_i32_1 = arith.constant 0 : i32
    return %c0_i32, %c0_i32_0 : i32, i32
  }
  func.func @transform_18(%arg0: i32) -> (i32, i32) {
    %c0_i32 = arith.constant 0 : i32
    %c0_i32_0 = arith.constant 0 : i32
    %c0_i32_1 = arith.constant 0 : i32
    return %c0_i32, %c0_i32_0 : i32, i32
  }
  func.func @transform_19(%arg0: i32) -> (i32, i32) {
    %c0_i32 = arith.constant 0 : i32
    %c0_i32_0 = arith.constant 0 : i32
    %c0_i32_1 = arith.constant 0 : i32
    return %c0_i32, %c0_i32_0 : i32, i32
  }
  func.func @transform_20(%arg0: i32) -> (i32, i32, i32) {
    %c0_i32 = arith.constant 0 : i32
    %c0_i32_0 = arith.constant 0 : i32
    %c0_i32_1 = arith.constant 0 : i32
    return %arg0, %c0_i32, %c0_i32_0 : i32, i32, i32
  }
}

</mosaic_0001>

<bundles_post_ra>
// kernel: tpu_custom_call.1
= control target key start
LH: loop header
LB: loop body
LE: loop exit
PB: predicated region body
PF: predicated region fallthrough
CT: control target
= control target key end

     0   :  { %s4867_s0 = inlined_call_operand.hbm [shape: f32[2,8,32], index: 0, kind: input, shape index: {}]   ;;  %s4868_s1 = inlined_call_operand.hbm [shape: f32[2,1,8], index: 1, kind: input, shape index: {}]   ;;  %s4869_s2 = inlined_call_operand.hbm [shape: f32[1,32], index: 2, kind: input, shape index: {}]   ;;  %s4870_s3 = inlined_call_operand.hbm [shape: f32[1,32], index: 3, kind: input, shape index: {}]   ;;  %s4871_s4 = inlined_call_operand.vmem [shape: f32[2,32,96], index: 4, kind: input, shape index: {}]   ;;  %s4872_s5 = inlined_call_operand.hbm [shape: f32[2,1,96], index: 5, kind: input, shape index: {}]   ;;  %s4873_s6 = inlined_call_operand.vmem [shape: f32[2,32,32], index: 6, kind: input, shape index: {}]   ;;  %s4874_s7 = inlined_call_operand.hbm [shape: f32[2,1,32], index: 7, kind: input, shape index: {}]   ;;  %s4875_s8 = inlined_call_operand.hbm [shape: f32[2,1,32], index: 8, kind: input, shape index: {}]   ;;  %s4876_s9 = inlined_call_operand.hbm [shape: f32[2,1,32], index: 9, kind: input, shape index: {}]   ;;  %s4877_s10 = inlined_call_operand.vmem [shape: f32[2,32,64], index: 10, kind: input, shape index: {}]   ;;  %s4878_s11 = inlined_call_operand.hbm [shape: f32[2,1,64], index: 11, kind: input, shape index: {}]   ;;  %s4879_s12 = inlined_call_operand.vmem [shape: f32[2,64,32], index: 12, kind: input, shape index: {}]   ;;  %s4880_s13 = inlined_call_operand.hbm [shape: f32[2,1,32], index: 13, kind: input, shape index: {}]   ;;  %s4881_s14 = inlined_call_operand.hbm [shape: f32[2,1,32], index: 14, kind: input, shape index: {}]   ;;  %s4882_s15 = inlined_call_operand.hbm [shape: f32[2,1,32], index: 15, kind: input, shape index: {}]   ;;  %s4883_s16 = inlined_call_operand.vmem [shape: f32[32,32], index: 16, kind: input, shape index: {}]   ;;  %s4884_s17 = inlined_call_operand.hbm [shape: f32[1,32], index: 17, kind: input, shape index: {}]   ;;  %s4885_s18 = inlined_call_operand.vmem [shape: f32[32,128], index: 18, kind: input, shape index: {}]   ;;  %s4886_s19 = inlined_call_operand.vmem [shape: f32[1,128], index: 19, kind: input, shape index: {}]   ;;  %s4887_s20 = inlined_call_operand.hbm [shape: f32[2,1,128], index: 20, kind: output, shape index: {}]  }
   0x1   :  { %4916 = sst [smem:[#allocation35_spill]] %s4867_s0 }
   0x2   :  { %4917 = sst [smem:[#allocation36_spill]] %s4868_s1 }
   0x3   :  { %4918 = sst [smem:[#allocation37_spill]] %s4869_s2 }
   0x4   :  { %4919 = sst [smem:[#allocation38_spill]] %s4870_s3 }
   0x5   :  { %4920 = sst [smem:[#allocation39_spill]] %s4871_s4 }
   0x6   :  { %4921 = sst [smem:[#allocation40_spill]] %s4872_s5 }
   0x7   :  { %4922 = sst [smem:[#allocation41_spill]] %s4873_s6 }
   0x8   :  { %4923 = sst [smem:[#allocation42_spill]] %s4874_s7 }
   0x9   :  { %4924 = sst [smem:[#allocation43_spill]] %s4875_s8 }
   0xa   :  { %4925 = sst [smem:[#allocation44_spill]] %s4876_s9 }
   0xb   :  { %4926 = sst [smem:[#allocation45_spill]] %s4877_s10 }
   0xc   :  { %4927 = sst [smem:[#allocation46_spill]] %s4879_s12 }
   0xd   :  { %4928 = sst [smem:[#allocation47_spill]] %s4883_s16 }
   0xe   :  { %4929 = sst [smem:[#allocation48_spill]] %s4885_s18 }
   0xf   :  { %4930 = sst [smem:[#allocation49_spill]] %s4886_s19 }
  0x10   :  { %4931 = sst [smem:[#allocation50_spill]] %s4887_s20 }
  0x11   :  { %25 = vsyncpa [#allocation3], 0 }
  0x12   :  { %27 = vsyncpa [#allocation3 + $0x1], 0 }
  0x13   :  { %28 = vsyncpa [#allocation6], 0 }
  0x14   :  { %30 = vsyncpa [#allocation6 + $0x1], 0 }
  0x15   :  { %31 = vsyncpa [#allocation9], 0 }
  0x16   :  { %32 = vsyncpa [#allocation12], 0 }
  0x17   :  { %33 = vsyncpa [#allocation15], 0 }
  0x18   :  { %34 = vsyncpa [#allocation18], 0 }
  0x19   :  { %35 = vsyncpa [#allocation21], 0 }
  0x1a   :  { %36 = vsyncpa [#allocation4], 0 }
  0x1b   :  { %38 = vsyncpa [#allocation4 + $0x1], 0  ;;  %s4090_s1 = smov 0   ;;  %s4092_s22 = smov 0  }
  0x1c   :  { %s4094_s23 = smov 0   ;;  %s4096_s24 = smov 0  }
  0x1d LB: > { %s3961_s2 = smov [#allocation7]   ;;  %s4111_s3 = sadd.s32 4294967295, %s3959_s24   ;;  %s3959_s24 = sphi %s4096_s24, %s4986_s24   ;;  %s3955_s23 = sphi %s4094_s23, %s4985_s23   ;;  %s3951_s22 = sphi %s4092_s22, %s4984_s22   ;;  %s3947_s1 = sphi %s4090_s1, %s4983_s1  }
  0x1e   : > { %s518_s25 = sshll.u32 %s3961_s2, 4  ;;  %4932 = sst [smem:[#allocation33_spill]] %s4111_s3  ;;  %s4116_s25 = int_to_ptr.vmem [resolvable:$true] %s518_s25 }
  0x1f   : > { %p2880_p0 = scmp.ge.s32.totalorder %s3959_s24, 1  ;;  %p4905_p1 = scmp.eq.s32.totalorder %s4111_s3, 0 }
  0x20   : > { %p505_p2 = scmp.lt.s32.totalorder %s3959_s24, 3  ;;  %s3962_s27 = smov [#allocation8]  }
  0x21   : > { %s529_s28 = sshll.u32 %s3962_s27, 4  ;;  %s3963_s29 = smov [#allocation11]   ;;  %s4125_s28 = int_to_ptr.vmem [resolvable:$true] %s529_s28 }
  0x22   : > { %p4118_p3 = pnand %p2880_p0, %p505_p2  ;;  %s558_s30 = sshll.u32 %s3963_s29, 4  ;;  %s4133_s30 = int_to_ptr.vmem [resolvable:$true] %s558_s30 }
  0x23   : > { %s4936_s2 = sld [smem:[#allocation37_spill]] }
  0x24   : > { %s4933_s26 = scalar_select %p4118_p3, 1, 0 }
  0x25   : > { %p3345_p5 = pneg %p4118_p3 }
  0x26   : > { %4934 = sst [smem:[#allocation34_spill]] %s4933_s26 }
  0x27   : > { %p4129_p6 = pnand %p3345_p5, %p4905_p1 }
  0x29   : > { %s3497_s20 = scalar_lea.hbm %s4936_s2, 16  ;;  %p4143_p8 = pneg %p4129_p6 }
  0x2a   : > { %p3498_p7 = scmp.ne.s32.totalorder %s4936_s2, %s3497_s20  ;;  %p3504_p11 = scmp.lt.u32.totalorder %s3497_s20, %s4936_s2 }
  0x2c   : > { %p3500_p9 = pnand %p4143_p8, %p3498_p7 }
  0x2e   : > { %p3501_p10 = pneg %p3500_p9 }
  0x30   : > { %p3506_p12 = pnand %p3504_p11, %p3501_p10 }
  0x32   : > { %3509 = shalt.err (!%p3506_p12)
}
  0x33   : > { %s3510_s18 = scalar_lea.vmem %s4116_s25, 16  ;;  %s3517_s19 = scalar_lea.vmem %s4116_s25, 32 }
  0x34   : > { %p3511_p13 = scmp.ne.s32.totalorder %s4116_s25, %s3510_s18  ;;  %p3518_p5 = scmp.lt.s32.totalorder %s4116_s25, %s4116_s25 }
  0x35   : > { %p3519_p7 = scmp.lt.s32.totalorder %s3517_s19, %s3510_s18 }
  0x36   : > { %p3513_p0 = pnand %p3511_p13, %p4143_p8 }
  0x37   : > { %p3520_p9 = por %p3519_p7, %p3518_p5 }
  0x38   : > { %p3514_p2 = pneg %p3513_p0 }
  0x3a   : > { %p3521_p4 = pnand %p3520_p9, %p3514_p2 }
  0x3c   : > { %3524 = shalt.err (!%p3521_p4)
}
  0x3d   : > { %3348 = dma.hbm_to_vmem [thread:$0]  (!%p4129_p6), %s4936_s2, 16, %s4116_s25, [#allocation6]  }
  0x3e   : > { %s4938_s29 = sld [smem:[#allocation38_spill]] }
  0x44   : > { %s3525_s12 = scalar_lea.hbm %s4938_s29, 16 }
  0x45   : > { %p3526_p10 = scmp.ne.s32.totalorder %s4938_s29, %s3525_s12  ;;  %p3532_p4 = scmp.lt.u32.totalorder %s3525_s12, %s4938_s29 }
  0x47   : > { %p3528_p11 = pnand %p3526_p10, %p4143_p8 }
  0x49   : > { %p3529_p12 = pneg %p3528_p11 }
  0x4b   : > { %p3534_p13 = pnand %p3532_p4, %p3529_p12 }
  0x4d   : > { %3537 = shalt.err (!%p3534_p13)
}
  0x4e   : > { %s3538_s25 = scalar_lea.vmem %s4125_s28, 16  ;;  %s3545_s6 = scalar_lea.vmem %s4125_s28, 32 }
  0x4f   : > { %p3539_p0 = scmp.ne.s32.totalorder %s4125_s28, %s3538_s25  ;;  %p3546_p7 = scmp.lt.s32.totalorder %s4125_s28, %s4125_s28 }
  0x50   : > { %p3547_p9 = scmp.lt.s32.totalorder %s3545_s6, %s3538_s25 }
  0x51   : > { %p3541_p2 = pnand %p3539_p0, %p4143_p8 }
  0x52   : > { %p3548_p10 = por %p3547_p9, %p3546_p7 }
  0x53   : > { %p3542_p5 = pneg %p3541_p2 }
  0x55   : > { %p3549_p11 = pnand %p3548_p10, %p3542_p5 }
  0x57   : > { %3552 = shalt.err (!%p3549_p11)
}
  0x58   : > { %3351 = dma.hbm_to_vmem [thread:$0]  (!%p4129_p6), %s4938_s29, 16, %s4125_s28, [#allocation9]  }
  0x59   : > { %s4939_s7 = sld [smem:[#allocation42_spill]] }
  0x5f   : > { %s3553_s0 = scalar_lea.hbm %s4939_s7, 32 }
  0x60   : > { %p3554_p12 = scmp.ne.s32.totalorder %s4939_s7, %s3553_s0  ;;  %p3560_p0 = scmp.lt.u32.totalorder %s3553_s0, %s4939_s7 }
  0x62   : > { %p3556_p4 = pnand %p3554_p12, %p4143_p8 }
  0x64   : > { %p3557_p13 = pneg %p3556_p4 }
  0x66   : > { %p3562_p2 = pnand %p3560_p0, %p3557_p13 }
  0x68   : > { %3565 = shalt.err (!%p3562_p2)
}
  0x69   : > { %s3566_s28 = scalar_lea.vmem %s4133_s30, 32  ;;  %p3574_p10 = scmp.lt.s32.totalorder %s4133_s30, %s4133_s30 }
  0x6a   : > { %p3567_p5 = scmp.ne.s32.totalorder %s4133_s30, %s3566_s28  ;;  %p3575_p11 = scmp.lt.s32.totalorder %s3566_s28, %s3566_s28 }
  0x6c   : > { %p3569_p7 = pnand %p3567_p5, %p4143_p8  ;;  %p3576_p12 = por %p3575_p11, %p3574_p10 }
  0x6e   : > { %p3570_p9 = pneg %p3569_p7 }
  0x70   : > { %p3577_p4 = pnand %p3576_p12, %p3570_p9 }
  0x72   : > { %3580 = shalt.err (!%p3577_p4)
}
  0x73   : > { %s3964_s6 = smov 16   ;;  %s3965_s10 = smov 1  }
  0x74   : > { %3357 = dma.hbm_to_vmem [thread:$0]  (!%p4129_p6), %s4939_s7, 32, %s4133_s30, [#allocation12], %s3964_s6, %s3964_s6, %s3965_s10  }
  0x75   : > { %s3966_s20 = smov [#allocation14]   ;;  %s3967_s21 = smov [#allocation17]  }
  0x76   : > { %s584_s0 = sshll.u32 %s3966_s20, 4  ;;  %s616_s18 = sshll.u32 %s3967_s21, 4  ;;  %s585_s0 = int_to_ptr.vmem [resolvable:$true] %s584_s0  ;;  %s617_s18 = int_to_ptr.vmem [resolvable:$true] %s616_s18 }
  0x77   : > { %s4940_s9 = sld [smem:[#allocation44_spill]] }
  0x7d   : > { %s3581_s28 = scalar_lea.hbm %s4940_s9, 32 }
  0x7e   : > { %p3582_p13 = scmp.ne.s32.totalorder %s4940_s9, %s3581_s28  ;;  %p3588_p5 = scmp.lt.u32.totalorder %s3581_s28, %s4940_s9 }
  0x80   : > { %p3584_p0 = pnand %p3582_p13, %p4143_p8 }
  0x82   : > { %p3585_p2 = pneg %p3584_p0 }
  0x84   : > { %p3590_p7 = pnand %p3588_p5, %p3585_p2 }
  0x86   : > { %3593 = shalt.err (!%p3590_p7)
}
  0x87   : > { %s3594_s30 = scalar_lea.vmem %s585_s0, 32  ;;  %p3602_p12 = scmp.lt.s32.totalorder %s585_s0, %s585_s0 }
  0x88   : > { %p3595_p9 = scmp.ne.s32.totalorder %s585_s0, %s3594_s30  ;;  %p3603_p4 = scmp.lt.s32.totalorder %s3594_s30, %s3594_s30 }
  0x8a   : > { %p3597_p10 = pnand %p3595_p9, %p4143_p8  ;;  %p3604_p1 = por %p3603_p4, %p3602_p12 }
  0x8c   : > { %p3598_p11 = pneg %p3597_p10 }
  0x8e   : > { %p3605_p3 = pnand %p3604_p1, %p3598_p11 }
  0x90   : > { %3608 = shalt.err (!%p3605_p3)
}
  0x91   : > { %3363 = dma.hbm_to_vmem [thread:$0]  (!%p4129_p6), %s4940_s9, 32, %s585_s0, [#allocation15], %s3964_s6, %s3964_s6, %s3965_s10  }
  0x92   : > { %s3609_s12 = scalar_lea.hbm %s4880_s13, 32 }
  0x93   : > { %p3610_p1 = scmp.ne.s32.totalorder %s4880_s13, %s3609_s12  ;;  %p3616_p0 = scmp.lt.u32.totalorder %s3609_s12, %s4880_s13 }
  0x95   : > { %p3612_p3 = pnand %p3610_p1, %p4143_p8 }
  0x97   : > { %p3613_p13 = pneg %p3612_p3 }
  0x99   : > { %p3618_p2 = pnand %p3616_p0, %p3613_p13 }
  0x9b   : > { %3621 = shalt.err (!%p3618_p2)
}
  0x9c   : > { %s3622_s25 = scalar_lea.vmem %s617_s18, 32  ;;  %p3630_p10 = scmp.lt.s32.totalorder %s617_s18, %s617_s18 }
  0x9d   : > { %p3623_p5 = scmp.ne.s32.totalorder %s617_s18, %s3622_s25  ;;  %p3631_p11 = scmp.lt.s32.totalorder %s3622_s25, %s3622_s25 }
  0x9f   : > { %p3625_p7 = pnand %p3623_p5, %p4143_p8  ;;  %p3632_p12 = por %p3631_p11, %p3630_p10 }
  0xa1   : > { %p3626_p9 = pneg %p3625_p7 }
  0xa3   : > { %p3633_p4 = pnand %p3632_p12, %p3626_p9 }
  0xa5   : > { %3636 = shalt.err (!%p3633_p4)
}
  0xa6   : > { %3369 = dma.hbm_to_vmem [thread:$0]  (!%p4129_p6), %s4880_s13, 32, %s617_s18, [#allocation18], %s3964_s6, %s3964_s6, %s3965_s10  }
  0xa7   : > { %s3968_s30 = smov [#allocation20]   ;;  %s3969_s26 = smov [#allocation10]  }
  0xa8   : > { %s642_s3 = sshll.u32 %s3968_s30, 4  ;;  %s542_s2 = sshll.u32 %s3969_s26, 4  ;;  %s643_s3 = int_to_ptr.vmem [resolvable:$true] %s642_s3  ;;  %s543_s2 = int_to_ptr.vmem [resolvable:$true] %s542_s2 }
  0xa9   : > { %s3637_s16 = scalar_lea.hbm %s4882_s15, 32 }
  0xaa   : > { %p3638_p1 = scmp.ne.s32.totalorder %s4882_s15, %s3637_s16  ;;  %p3644_p0 = scmp.lt.u32.totalorder %s3637_s16, %s4882_s15 }
  0xac   : > { %p3640_p3 = pnand %p3638_p1, %p4143_p8 }
  0xae   : > { %p3641_p13 = pneg %p3640_p3 }
  0xb0   : > { %p3646_p2 = pnand %p3644_p0, %p3641_p13 }
  0xb2   : > { %3649 = shalt.err (!%p3646_p2)
}
  0xb3   : > { %s3650_s18 = scalar_lea.vmem %s643_s3, 32  ;;  %p3658_p10 = scmp.lt.s32.totalorder %s643_s3, %s643_s3 }
  0xb4   : > { %p3651_p5 = scmp.ne.s32.totalorder %s643_s3, %s3650_s18  ;;  %p3659_p11 = scmp.lt.s32.totalorder %s3650_s18, %s3650_s18 }
  0xb6   : > { %p3653_p7 = pnand %p3651_p5, %p4143_p8  ;;  %p3660_p12 = por %p3659_p11, %p3658_p10 }
  0xb8   : > { %p3654_p9 = pneg %p3653_p7 }
  0xba   : > { %p3661_p4 = pnand %p3660_p12, %p3654_p9 }
  0xbc   : > { %3664 = shalt.err (!%p3661_p4)
}
  0xbd   : > { %3375 = dma.hbm_to_vmem [thread:$0]  (!%p4129_p6), %s4882_s15, 32, %s643_s3, [#allocation21], %s3964_s6, %s3964_s6, %s3965_s10  }
  0xbe   : > { %s4941_s5 = sld [smem:[#allocation40_spill]] }
  0xc4   : > { %s3665_s29 = scalar_lea.hbm %s4941_s5, 32 }
  0xc5   : > { %p3666_p1 = scmp.ne.s32.totalorder %s4941_s5, %s3665_s29  ;;  %p3672_p0 = scmp.lt.u32.totalorder %s3665_s29, %s4941_s5 }
  0xc7   : > { %p3668_p3 = pnand %p3666_p1, %p4143_p8 }
  0xc9   : > { %p3669_p13 = pneg %p3668_p3 }
  0xcb   : > { %p3674_p2 = pnand %p3672_p0, %p3669_p13 }
  0xcd   : > { %3677 = shalt.err (!%p3674_p2)
}
  0xce   : > { %s3678_s19 = scalar_lea.vmem %s543_s2, 32  ;;  %p3686_p10 = scmp.lt.s32.totalorder %s543_s2, %s543_s2 }
  0xcf   : > { %p3679_p5 = scmp.ne.s32.totalorder %s543_s2, %s3678_s19  ;;  %p3687_p11 = scmp.lt.s32.totalorder %s3678_s19, %s3678_s19 }
  0xd1   : > { %p3681_p7 = pnand %p3679_p5, %p4143_p8  ;;  %p3688_p12 = por %p3687_p11, %p3686_p10 }
  0xd3   : > { %p3682_p9 = pneg %p3681_p7 }
  0xd5   : > { %p3689_p4 = pnand %p3688_p12, %p3682_p9 }
  0xd7   : > { %3692 = shalt.err (!%p3689_p4)
}
  0xd8   : > { %3354 = dma.hbm_to_vmem [thread:$0]  (!%p4129_p6), %s4941_s5, 32, %s543_s2, [#allocation9], %s3964_s6, %s3964_s6, %s3965_s10  }
  0xd9   : > { %s3970_s18 = smov [#allocation13]   ;;  %s3971_s28 = smov [#allocation16]  }
  0xda   : > { %s571_s0 = sshll.u32 %s3970_s18, 4  ;;  %s600_s30 = sshll.u32 %s3971_s28, 4  ;;  %s572_s0 = int_to_ptr.vmem [resolvable:$true] %s571_s0  ;;  %s601_s30 = int_to_ptr.vmem [resolvable:$true] %s600_s30 }
  0xdb   : > { %s4942_s8 = sld [smem:[#allocation43_spill]] }
  0xe1   : > { %s3693_s12 = scalar_lea.hbm %s4942_s8, 32 }
  0xe2   : > { %p3694_p1 = scmp.ne.s32.totalorder %s4942_s8, %s3693_s12  ;;  %p3700_p0 = scmp.lt.u32.totalorder %s3693_s12, %s4942_s8 }
  0xe4   : > { %p3696_p3 = pnand %p3694_p1, %p4143_p8 }
  0xe6   : > { %p3697_p13 = pneg %p3696_p3 }
  0xe8   : > { %p3702_p2 = pnand %p3700_p0, %p3697_p13 }
  0xea   : > { %3705 = shalt.err (!%p3702_p2)
}
  0xeb   : > { %s3706_s2 = scalar_lea.vmem %s572_s0, 32  ;;  %p3714_p10 = scmp.lt.s32.totalorder %s572_s0, %s572_s0 }
  0xec   : > { %p3707_p5 = scmp.ne.s32.totalorder %s572_s0, %s3706_s2  ;;  %p3715_p11 = scmp.lt.s32.totalorder %s3706_s2, %s3706_s2 }
  0xee   : > { %p3709_p7 = pnand %p3707_p5, %p4143_p8  ;;  %p3716_p12 = por %p3715_p11, %p3714_p10 }
  0xf0   : > { %p3710_p9 = pneg %p3709_p7 }
  0xf2   : > { %p3717_p4 = pnand %p3716_p12, %p3710_p9 }
  0xf4   : > { %3720 = shalt.err (!%p3717_p4)
}
  0xf5   : > { %3360 = dma.hbm_to_vmem [thread:$0]  (!%p4129_p6), %s4942_s8, 32, %s572_s0, [#allocation12], %s3964_s6, %s3964_s6, %s3965_s10  }
  0xf6   : > { %s3721_s26 = scalar_lea.hbm %s4878_s11, 32 }
  0xf7   : > { %p3722_p1 = scmp.ne.s32.totalorder %s4878_s11, %s3721_s26  ;;  %p3728_p0 = scmp.lt.u32.totalorder %s3721_s26, %s4878_s11 }
  0xf9   : > { %p3724_p3 = pnand %p3722_p1, %p4143_p8 }
  0xfb   : > { %p3725_p13 = pneg %p3724_p3 }
  0xfd   : > { %p3730_p2 = pnand %p3728_p0, %p3725_p13 }
  0xff   : > { %3733 = shalt.err (!%p3730_p2)
}
 0x100   : > { %s3734_s21 = scalar_lea.vmem %s601_s30, 32  ;;  %p3742_p10 = scmp.lt.s32.totalorder %s601_s30, %s601_s30 }
 0x101   : > { %p3735_p5 = scmp.ne.s32.totalorder %s601_s30, %s3734_s21  ;;  %p3743_p11 = scmp.lt.s32.totalorder %s3734_s21, %s3734_s21 }
 0x103   : > { %p3737_p7 = pnand %p3735_p5, %p4143_p8  ;;  %p3744_p12 = por %p3743_p11, %p3742_p10 }
 0x105   : > { %p3738_p9 = pneg %p3737_p7 }
 0x107   : > { %p3745_p4 = pnand %p3744_p12, %p3738_p9 }
 0x109   : > { %3748 = shalt.err (!%p3745_p4)
}
 0x10a   : > { %3366 = dma.hbm_to_vmem [thread:$0]  (!%p4129_p6), %s4878_s11, 32, %s601_s30, [#allocation15], %s3964_s6, %s3964_s6, %s3965_s10  }
 0x10b   : > { %s3972_s2 = smov [#allocation19]   ;;  %s3973_s25 = smov [#allocation22]  }
 0x10c   : > { %s629_s3 = sshll.u32 %s3972_s2, 4  ;;  %s659_s18 = sshll.u32 %s3973_s25, 4  ;;  %s630_s3 = int_to_ptr.vmem [resolvable:$true] %s629_s3  ;;  %s660_s18 = int_to_ptr.vmem [resolvable:$true] %s659_s18 }
 0x10d   : > { %s3749_s29 = scalar_lea.hbm %s4881_s14, 32 }
 0x10e   : > { %p3750_p1 = scmp.ne.s32.totalorder %s4881_s14, %s3749_s29  ;;  %p3756_p0 = scmp.lt.u32.totalorder %s3749_s29, %s4881_s14 }
 0x110   : > { %p3752_p3 = pnand %p3750_p1, %p4143_p8 }
 0x112   : > { %p3753_p13 = pneg %p3752_p3 }
 0x114   : > { %p3758_p2 = pnand %p3756_p0, %p3753_p13 }
 0x116   : > { %3761 = shalt.err (!%p3758_p2)
}
 0x117   : > { %s3762_s30 = scalar_lea.vmem %s630_s3, 32  ;;  %p3770_p10 = scmp.lt.s32.totalorder %s630_s3, %s630_s3 }
 0x118   : > { %p3763_p5 = scmp.ne.s32.totalorder %s630_s3, %s3762_s30  ;;  %p3771_p11 = scmp.lt.s32.totalorder %s3762_s30, %s3762_s30 }
 0x11a   : > { %p3765_p7 = pnand %p3763_p5, %p4143_p8  ;;  %p3772_p12 = por %p3771_p11, %p3770_p10 }
 0x11c   : > { %p3766_p9 = pneg %p3765_p7 }
 0x11e   : > { %p3773_p4 = pnand %p3772_p12, %p3766_p9 }
 0x120   : > { %3776 = shalt.err (!%p3773_p4)
}
 0x121   : > { %3372 = dma.hbm_to_vmem [thread:$0]  (!%p4129_p6), %s4881_s14, 32, %s630_s3, [#allocation18], %s3964_s6, %s3964_s6, %s3965_s10  }
 0x122   : > { %s3777_s28 = scalar_lea.hbm %s4884_s17, 16 }
 0x123   : > { %p3778_p1 = scmp.ne.s32.totalorder %s4884_s17, %s3777_s28  ;;  %p3784_p0 = scmp.lt.u32.totalorder %s3777_s28, %s4884_s17 }
 0x125   : > { %p3780_p3 = pnand %p3778_p1, %p4143_p8 }
 0x127   : > { %p3781_p13 = pneg %p3780_p3 }
 0x129   : > { %p3786_p2 = pnand %p3784_p0, %p3781_p13 }
 0x12b   : > { %3789 = shalt.err (!%p3786_p2)
}
 0x12c   : > { %s3790_s20 = scalar_lea.vmem %s660_s18, 16  ;;  %s3797_s6 = scalar_lea.vmem %s660_s18, 32 }
 0x12d   : > { %p3791_p5 = scmp.ne.s32.totalorder %s660_s18, %s3790_s20  ;;  %p3798_p10 = scmp.lt.s32.totalorder %s660_s18, %s660_s18 }
 0x12e   : > { %p3799_p11 = scmp.lt.s32.totalorder %s3797_s6, %s3790_s20 }
 0x12f   : > { %p3793_p7 = pnand %p3791_p5, %p4143_p8 }
 0x130   : > { %p3800_p12 = por %p3799_p11, %p3798_p10 }
 0x131   : > { %p3794_p9 = pneg %p3793_p7 }
 0x133   : > { %p3801_p4 = pnand %p3800_p12, %p3794_p9 }
 0x135   : > { %3804 = shalt.err (!%p3801_p4)
}
 0x136   : > { %s4943_s27 = sld [smem:[#allocation33_spill]]  ;;  %s2879_s21 = sadd.s32 4294967294, %s3959_s24  }
 0x137   : > { %3378 = dma.hbm_to_vmem [thread:$0]  (!%p4129_p6), %s4884_s17, 16, %s660_s18, [#allocation21]  }
 0x138   : > { %s4382_s4 = sadd.s32 1, %s3959_s24   ;;  %s51_s30 = sadd.s32 1, %s3955_s23 }
 0x139   : > { %s48_s0 = ssub.s32 %s3959_s24, %s4382_s4  ;;  %p58_p8 = scmp.ne.s32.totalorder %s3955_s23, %s3951_s22 }
 0x13a   : > { %p49_p1 = scmp.eq.s32.totalorder %s48_s0, 0  ;;  %p59_p3 = scmp.eq.s32.totalorder %s3959_s24, 0 }
 0x13b   : > { %p64_p13 = scmp.ne.s32.totalorder %s3951_s22, %s3947_s1  ;;  %p498_p9 = scmp.eq.s32.totalorder %s2879_s21, 1 }
 0x13c   : > { %p492_p0 = scmp.eq.s32.totalorder %s4943_s27, 1  ;;  %p60_p2 = por %p59_p3, %p58_p8 }
 0x13d   : > { %s4394_s19 = scalar_select %p49_p1, %s3955_s23, %s51_s30  }
 0x13e   : > { %p4944_p5 = scmp.eq.s32.totalorder %s4943_s27, 0  ;;  %p4402_p6 = por %p492_p0, %p58_p8 }
 0x13f   : > { %p3401_p10 = scmp.lt.s32.totalorder %s3959_s24, 2  ;;  %s4408_s25 = sand.u32 1, %s3955_s23  }
 0x140   : > { %p4398_p7 = por %p4944_p5, %p64_p13  ;;  %p4410_p11 = por %p498_p9, %p64_p13 }
 0x141   : > { %s4946_s2 = scalar_select %p4402_p6, 1, 0 }
 0x142   : > { %s4945_s18 = scalar_select %p4398_p7, 1, 0 }
 0x143   : > { %s4947_s28 = scalar_select %p4410_p11, 1, 0 }
 0x144   : > { %s2893_s26 = sshll.u32 %s4408_s25, 3  ;;  %s2894_s29 = sshll.u32 %s3959_s24, 7 }
 0x145   : > { %s4948_s20 = sld [smem:[#allocation35_spill]]  ;;  %s680_s10 = scalar_lea.vmem [#allocation2], %s2893_s26 }
 0x146   : > { %s687_s3 = sshll.u32 %s680_s10, 4  ;;  %p4421_p12 = pnand %p3401_p10, %p60_p2  ;;  %s4425_s3 = int_to_ptr.vmem [resolvable:$true] %s687_s3 }
 0x147   : > { %s677_s30 = scalar_lea.sflag [#allocation3], %s4408_s25 }
 0x148   : > { %p3807_p8 = pneg %p4421_p12 }
 0x14b   : > { %s4419_s6 = scalar_lea.hbm %s4948_s20, %s2894_s29  ;;  %s3810_s12 = scalar_lea.hbm %s4948_s20, 256 }
 0x14c   : > { %s3805_s0 = scalar_lea.hbm %s4419_s6, 128  ;;  %p3811_p13 = scmp.lt.u32.totalorder %s4419_s6, %s4948_s20 }
 0x14d   : > { %p3806_p4 = scmp.ne.s32.totalorder %s4419_s6, %s3805_s0  ;;  %p3812_p0 = scmp.lt.u32.totalorder %s3810_s12, %s3805_s0 }
 0x14e   : > { %p3814_p5 = scmp.lt.u32.totalorder %s3805_s0, %s4419_s6 }
 0x14f   : > { %p3808_p1 = pnand %p3807_p8, %p3806_p4  ;;  %p3813_p2 = por %p3812_p0, %p3811_p13 }
 0x151   : > { %p3809_p3 = pneg %p3808_p1  ;;  %p3815_p9 = por %p3814_p5, %p3813_p2 }
 0x153   : > { %p3816_p10 = pnand %p3815_p9, %p3809_p3 }
 0x155   : > { %3819 = shalt.err (!%p3816_p10)
}
 0x156   : > { %s3820_s21 = scalar_lea.vmem %s4425_s3, 128  ;;  %s3974_s26 = smov [#allocation2]  }
 0x157   : > { %p3821_p4 = scmp.ne.s32.totalorder %s4425_s3, %s3820_s21  ;;  %s3825_s29 = sshll.u32 %s3974_s26, 4  ;;  %s3826_s29 = int_to_ptr.vmem [resolvable:$false] %s3825_s29 }
 0x158   : > { %s3827_s16 = scalar_lea.vmem %s3826_s29, 256  ;;  %p3828_p6 = scmp.lt.s32.totalorder %s4425_s3, %s3826_s29 }
 0x159   : > { %p3823_p1 = pnand %p3821_p4, %p3807_p8  ;;  %p3829_p13 = scmp.lt.s32.totalorder %s3827_s16, %s3820_s21 }
 0x15b   : > { %p3824_p11 = pneg %p3823_p1  ;;  %p3830_p0 = por %p3829_p13, %p3828_p6 }
 0x15d   : > { %p3831_p2 = pnand %p3830_p0, %p3824_p11 }
 0x15f   : > { %3834 = shalt.err (!%p3831_p2)
}
 0x160   : > { %3382 = dma.hbm_to_vmem [thread:$0]  (!%p4421_p12), %s4419_s6, 128, %s4425_s3, %s677_s30  }
 0x161   : > { %s2895_s0 = sshll.u32 %s3959_s24, 4  ;;  %s4950_s26 = sld [smem:[#allocation36_spill]] }
 0x162   : > { %s697_s21 = scalar_lea.vmem [#allocation5], %s4408_s25  ;;  %s4951_s16 = sand.u32 1, %s3959_s24  }
 0x163   : > { %s704_s29 = sshll.u32 %s697_s21, 4  ;;  %s695_s7 = scalar_lea.sflag [#allocation6], %s4951_s16  ;;  %s705_s29 = int_to_ptr.vmem [resolvable:$true] %s704_s29 }
 0x167   : > { %s4458_s5 = scalar_lea.hbm %s4950_s26, %s2895_s0  ;;  %s3840_s30 = scalar_lea.hbm %s4950_s26, 32 }
 0x168   : > { %s3835_s8 = scalar_lea.hbm %s4458_s5, 16  ;;  %p3841_p5 = scmp.lt.u32.totalorder %s4458_s5, %s4950_s26 }
 0x169   : > { %p3836_p6 = scmp.ne.s32.totalorder %s4458_s5, %s3835_s8  ;;  %p3842_p9 = scmp.lt.u32.totalorder %s3840_s30, %s3835_s8 }
 0x16a   : > { %p3844_p4 = scmp.lt.u32.totalorder %s3835_s8, %s4458_s5 }
 0x16b   : > { %p3838_p11 = pnand %p3836_p6, %p3807_p8  ;;  %p3843_p10 = por %p3842_p9, %p3841_p5 }
 0x16d   : > { %p3839_p3 = pneg %p3838_p11  ;;  %p3845_p1 = por %p3844_p4, %p3843_p10 }
 0x16f   : > { %p3846_p13 = pnand %p3845_p1, %p3839_p3 }
 0x171   : > { %3849 = shalt.err (!%p3846_p13)
}
 0x172   : > { %s3850_s25 = scalar_lea.vmem %s705_s29, 16  ;;  %s3975_s10 = smov [#allocation5]  }
 0x173   : > { %p3851_p0 = scmp.ne.s32.totalorder %s705_s29, %s3850_s25  ;;  %s3855_s21 = sshll.u32 %s3975_s10, 4  ;;  %s3856_s21 = int_to_ptr.vmem [resolvable:$false] %s3855_s21 }
 0x174   : > { %s3857_s16 = scalar_lea.vmem %s3856_s21, 32  ;;  %p3858_p11 = scmp.lt.s32.totalorder %s705_s29, %s3856_s21 }
 0x175   : > { %p3853_p2 = pnand %p3851_p0, %p3807_p8  ;;  %p3859_p7 = scmp.lt.s32.totalorder %s3857_s16, %s3850_s25 }
 0x177   : > { %p3854_p6 = pneg %p3853_p2  ;;  %p3860_p5 = por %p3859_p7, %p3858_p11 }
 0x179   : > { %p3861_p9 = pnand %p3860_p5, %p3854_p6 }
 0x17b   : > { %3864 = shalt.err (!%p3861_p9)
}
 0x17c   : > { %3385 = dma.hbm_to_vmem [thread:$0]  (!%p4421_p12), %s4458_s5, 16, %s705_s29, %s695_s7  }
 0x17d   : > { %s4952_s8 = sld [smem:[#allocation34_spill]] }
 0x183   : > { %p4953_p3 = scmp.ne.s32.totalorder %s4952_s8, 0 }
 0x184   : > { %s4485_s6 = sand.u32 (!%p4953_p3), 1, %s3951_s22   ;;  %p4954_p8 = scmp.ne.s32.totalorder (!%p4953_p3), %s4945_s18, 0 }
 0x185   : > { %713 = sbr.rel (%p4953_p3) target bundleno = 7207 (0x1c27), region = 100  ;;  %s2897_s3 = sshll.u32 (!%p4953_p3), %s4485_s6, 3 }
 0x186   : > { %s716_s30 = scalar_lea.sflag (!%p4953_p3), [#allocation3], %s4485_s6  ;;  %s719_s0 = scalar_lea.vmem (!%p4953_p3), [#allocation2], %s2897_s3 }
 0x18c   : > { %3910 = dma.done.wait (%p4954_p8), %s716_s30, 128  }
 0x18d   : > { %3912 = vsyncadd (%p4954_p8), %s716_s30, 4294967168  ;;  %s4955_s27 = sld [smem:[#allocation33_spill]]  ;;  %s727_s29 = scalar_lea.vmem [#allocation5], %s4485_s6 }
 0x193   : > { %s724_s5 = sand.u32 1, %s4955_s27  }
 0x194   : > { %s725_s7 = scalar_lea.sflag [#allocation6], %s724_s5 }
 0x195   : > { %3914 = dma.done.wait (%p4954_p8), %s725_s7, 16  }
 0x196   : > { %3916 = vsyncadd (%p4954_p8), %s725_s7, 4294967280  ;;  %p4956_p7 = scmp.eq.s32.totalorder %s4955_s27, 0 }
 0x198   : > { %3918 = dma.done.wait (%p4956_p7), [#allocation6], 16   ;;  %p4957_p12 = pmov %p4956_p7 }
 0x199   : > { %p4958_p10 = pmov %p4956_p7 }
 0x19a   : > { %3920 = vsyncadd (%p4957_p12), [#allocation6], 4294967280 }
 0x19b   : > { %3922 = dma.done.wait (%p4958_p10), [#allocation9], 48   ;;  %p4959_p4 = pmov %p4956_p7 }
 0x19d   : > { %3924 = vsyncadd (%p4959_p4), [#allocation9], 4294967248  ;;  %p4960_p1 = pmov %p4959_p4 }
 0x19f   : > { %3926 = dma.done.wait (%p4960_p1), [#allocation12], 64   ;;  %p4961_p13 = pmov %p4960_p1 }
 0x1a0   : > { %p4962_p0 = pmov %p4960_p1 }
 0x1a1   : > { %3928 = vsyncadd (%p4961_p13), [#allocation12], 4294967232 }
 0x1a2   : > { %3930 = dma.done.wait (%p4962_p0), [#allocation15], 64   ;;  %p4963_p2 = pmov %p4962_p0 }
 0x1a3   : > { %p4964_p6 = pmov %p4962_p0 }
 0x1a4   : > { %3932 = vsyncadd (%p4963_p2), [#allocation15], 4294967232 }
 0x1a5   : > { %3934 = dma.done.wait (%p4964_p6), [#allocation18], 64   ;;  %p4965_p11 = pmov %p4962_p0 }
 0x1a6   : > { %p4966_p5 = pmov %p4962_p0 }
 0x1a7   : > { %3936 = vsyncadd (%p4965_p11), [#allocation18], 4294967232 }
 0x1a8   : > { %3938 = dma.done.wait (%p4966_p5), [#allocation21], 48   ;;  %p4967_p9 = pmov %p4962_p0 }
 0x1a9   : > { %vm835_vm0 = vcmask 261120   ;;  %v831_v0 = vld [vmem:[%s719_s0] sm:$0xff]  ;;  %s4968_s25 = sld [smem:[#allocation39_spill]]  ;;  %v3976_v10 = vmov 0.0|0.0   ;;  %vm3977_vm1 = vmmov 0   ;;  %v3978_v13 = vmov 0.0  }
 0x1aa   : > { %3940 = vsyncadd (%p4967_p9), [#allocation21], 4294967248  ;;  %v836_v1 = vsel %vm835_vm0, %v831_v0, 0.0  ;;  %3223 = vmatprep.subr.bf16.mxu0 %v3976_v10  ;;  %3059 = vmatprep.mubr.msk.f32.mxu0 %vm3977_vm1, %v3978_v13  ;;  %v2909_v19 = vld [vmem:[#allocation7] ss:$0 sm:$0xff]  ;;  %s3979_s0 = smov 96  }
 0x1ab   : > { %837 = vadd.xlane.f32.xlu0 %v836_v1  ;;  %3062 = vmatprep.subr.mxu1 %v3978_v13  ;;  %v2910_v21 = vld [vmem:[#allocation8] ss:$0 sm:$0xff]  ;;  %v2911_v24 = vld [vmem:[#allocation10] ss:$0 sm:$0xff]  ;;  %vm956_vm2 = vcmask 130048   ;;  %vm1039_vm3 = vcmask 64512  }
 0x1ac   : > { %3064 = vmatprep.mubr.msk.f32.mxu1 %vm3977_vm1, %v3978_v13  ;;  %v4563_v30 = vld [vmem:[%s727_s29] ss:$0 sm:$0xff]  ;;  %s4910_s5 = smov 64   ;;  %s4912_s7 = smov 80   ;;  %vm1586_vm4 = vcmask 523264  }
 0x1ad   : > { %s4911_s29 = smov 112   ;;  %s4969_s10 = sld [smem:[#allocation41_spill]] }
 0x1ae   : > { %s4909_s8 = smov 48   ;;  %s4970_s3 = sld [smem:[#allocation45_spill]] }
 0x1af   : > { %v864_v7 = vld [vmem:[%s4968_s25] sm:$0xff]  ;;  %v865_v8 = vld [vmem:[%s4968_s25 + $0x8] sm:$0xff]  ;;  %v866_v9 = vld [vmem:[%s4968_s25 + $0x10] sm:$0xff]  ;;  %s4977_s21 = sld [smem:[#allocation48_spill]]  ;;  %s4978_s30 = sld [smem:[#allocation49_spill]] }
 0x1b0   : > { %v3224_v11 = vpack.c.bf16 %v865_v8, %v864_v7  ;;  %v867_v12 = vld [vmem:[%s4968_s25 + $0x18] sm:$0xff]  ;;  %s2972_s18 = sshll.u32 %s4955_s27, 4  ;;  %s2677_s9 = scalar_lea.sflag [#allocation4], %s4485_s6 }
 0x1b1   : > { %v3227_v14 = vpack.c.bf16 %v867_v12, %v866_v9  ;;  %v2918_v8 = vld [vmem:[#allocation11] ss:$0 sm:$0xff]  ;;  %p4980_p8 = scmp.ne.s32.totalorder %s4946_s2, 0  ;;  %s3984_s27 = smov [#allocation23]  }
 0x1b2   : > { %3225 = vmatpush3.bf16.msra.mxu0 %v3224_v11  ;;  %s3869_s16 = sshll.u32 %s3984_s27, 4  ;;  %s3870_s16 = int_to_ptr.vmem [resolvable:$false] %s3869_s16 }
 0x1b3   : > { %3226 = vmatprep.subr.bf16.mxu0 %v3976_v10  ;;  %v948_v42 = vld [vmem:[%s4969_s10] sm:$0xff]  ;;  %v949_v43 = vld [vmem:[%s4969_s10 + $0x8] sm:$0xff]  ;;  %v951_v1 = vld [vmem:[%s4969_s10 + $0x18] sm:$0xff] }
 0x1b4   : > { %v3230_v45 = vpack.c.bf16 %v949_v43, %v948_v42 }
 0x1b6   : > { %3228 = vmatpush3.bf16.msra.mxu0 %v3227_v14 }
 0x1b7   : > { %3084 = vmatprep.subr.mxu0 %v3978_v13 }
 0x238   : > { %v838_v2 = vpop.xlane.xlu0 %837 }
 0x239   : > { %v840_v3 = vmul.f32 0.03125, %v838_v2 }
 0x23b   : > { %v841_v4 = vsub.f32 %v831_v0, %v840_v3  ;;  %v950_v0 = vld [vmem:[%s4969_s10 + $0x10] sm:$0xff] }
 0x23c   : > { %v3233_v2 = vpack.c.bf16 %v951_v1, %v950_v0 }
 0x23d   : > { %v842_v5 = vmul.f32 %v841_v4, %v841_v4 }
 0x23f   : > { %v843_v6 = vsel %vm835_vm0, %v842_v5, 0.0 }
 0x240   : > { %844 = vadd.xlane.f32.xlu0 %v843_v6 }
 0x2cd   : > { %v845_v15 = vpop.xlane.xlu0 %844 }
 0x2ce   : > { %v846_v16 = vmul.f32 0.03125, %v845_v15 }
 0x2d0   : > { %v847_v17 = vadd.f32 1e-12, %v846_v16 }
 0x2d2   : > { %3467 = vrsqrt.f32 %v847_v17 }
 0x2dc   : > { %v3468_v18 = vpop.eup %3467 }
 0x2dd   : > { %v849_v20 = vmul.f32 %v3468_v18, %v841_v4 }
 0x2df   : > { %v856_v22 = vmul.f32 %v2909_v19, %v849_v20 }
 0x2e1   : > { %v4545_v23 = vadd.f32 %v2910_v21, %v856_v22  ;;  %v1478_v22 = vld [vmem:[%s4970_s3] sm:$0xff] }
 0x2e3   : > { %3060 = vmatmul.mubr.msk.f32.vlgmr.msra.gmra.mrb[0].mxu0 %vm835_vm0, %v4545_v23 }
 0x2e4   : > { %3086 = vmatprep.mubr.msk.f32.mxu0 %vm3977_vm1, %v3978_v13 }
 0x3b6   : > { %v944_v25 = vpop.f32.mrb[0].mxu0 }
 0x3b7   : > { %v4551_v26 = vadd.f32 %v2911_v24, %v944_v25  ;;  %v3061_v27 = vpop.f32.mrb[1].mxu0  ;;  %v1479_v24 = vld [vmem:[%s4970_s3 + $0x8] sm:$0xff] }
 0x3b8   : > { %v3236_v25 = vpack.c.bf16 %v1479_v24, %v1478_v22  ;;  %v2929_v22 = vld [vmem:[#allocation19] ss:$0 sm:$0xff] }
 0x3b9   : > { %954 = vrot.lane.b32.xlu1 %v4551_v26, %s3979_s0 }
 0x42b   : > { %v955_v28 = vpop.permute.xlu1 %954 }
 0x42c   : > { %3063 = vmatpush3.xpose.msk.msra.mxu1 %vm956_vm2, %v955_v28 }
 0x42d   : > { %3067 = vmatprep.subr.mxu1 %v3978_v13 }
 0x42f   : > { %3065 = vmatmul.mubr.msk.f32.vlgmr.msra.gmra.mrb[0].mxu1 %vm956_vm2, %v4551_v26 }
 0x430   : > { %3069 = vmatprep.mubr.msk.f32.mxu1 %vm3977_vm1, %v3978_v13 }
 0x502   : > { %v1027_v29 = vpop.f32.mrb[0].mxu1 }
 0x503   : > { %v1031_v31 = vmul.f32 0.25, %v1027_v29  ;;  %v3066_v32 = vpop.f32.mrb[1].mxu1 }
 0x505   : > { %v1038_v33 = vadd.f32 %v4563_v30, %v1031_v31 }
 0x507   : > { %v1040_v34 = vsel %vm1039_vm3, %v1038_v33, -inf }
 0x508   : > { %1041 = vmax.xlane.f32.xlu1 %v1040_v34 }
 0x595   : > { %v1042_v35 = vpop.xlane.xlu1 %1041 }
 0x596   : > { %v1043_v36 = vsub.f32 %v1038_v33, %v1042_v35  ;;  %v2923_v33 = vld [vmem:[#allocation13] ss:$0 sm:$0xff]  ;;  %v2924_v35 = vld [vmem:[#allocation14] ss:$0 sm:$0xff] }
 0x598   : > { %v1044_v37 = vmul.f32 1.442695, %v1043_v36 }
 0x59a   : > { %3469 = vpow2.f32 %v1044_v37 }
 0x5a4   : > { %v3470_v38 = vpop.eup %3469 }
 0x5a5   : > { %v1046_v39 = vsel %vm1039_vm3, %v3470_v38, 0.0 }
 0x5a6   : > { %1047 = vadd.xlane.f32.xlu0 %v1046_v39 }
 0x5bc   : > { %1051 = vrot.lane.b32.xlu0 %v4551_v26, %s4910_s5  ;;  %s4972_s5 = smov 80  }
 0x5c0   : > { %1209 = vrot.lane.b32.xlu0 %v4551_v26, %s4912_s7  ;;  %s4975_s7 = smov 48  }
 0x5c4   : > { %1207 = vrot.lane.b32.xlu0 %v4551_v26, %s4911_s29  ;;  %s4973_s29 = smov 112  }
 0x633   : > { %v1048_v40 = vpop.xlane.xlu0 %1047 }
 0x634   : > { %3471 = vrcp.f32 %v1048_v40 }
 0x637   : > { %v1052_v41 = vpop.permute.xlu0 %1051 }
 0x638   : > { %3068 = vmatpush3.msra.mxu1 %v1052_v41 }
 0x639   : > { %3229 = vmatprep.subr.bf16.mxu1 %v3976_v10 }
 0x63b   : > { %v1210_v47 = vpop.permute.xlu0 %1209 }
 0x63e   : > { %v3472_v44 = vpop.eup %3471 }
 0x63f   : > { %v1050_v46 = vmul.f32 %v3472_v44, %v3470_v38  ;;  %v1208_v50 = vpop.permute.xlu0 %1207 }
 0x641   : > { %3070 = vmatmul.mubr.msk.f32.vlgmr.msra.gmra.mrb[2].mxu1 %vm1039_vm3, %v1050_v46 }
 0x642   : > { %3231 = vmatpush3.bf16.msra.mxu1 %v3230_v45  ;;  %3076 = vmatprep.mubr.msk.f32.mxu1 %vm3977_vm1, %v3978_v13 }
 0x643   : > { %3079 = vmatprep.subr.mxu1 %v3978_v13 }
 0x714   : > { %v1123_v48 = vpop.f32.mrb[2].mxu1 }
 0x715   : > { %v3071_v49 = vpop.f32.mrb[3].mxu1  ;;  %3077 = vmatmul.mubr.msk.f32.vlgmr.msra.gmra.mrb[4].mxu1 %vm956_vm2, %v1123_v48 }
 0x716   : > { %3080 = vmatpush3.xpose.msk.msra.mxu1 %vm956_vm2, %v1210_v47  ;;  %3081 = vmatprep.mubr.msk.f32.mxu1 %vm3977_vm1, %v3978_v13 }
 0x717   : > { %3232 = vmatprep.subr.bf16.mxu1 %v3976_v10 }
 0x719   : > { %3082 = vmatmul.mubr.msk.f32.vlgmr.msra.gmra.mrb[6].mxu1 %vm956_vm2, %v1208_v50  ;;  %v2925_v50 = vld [vmem:[#allocation16] ss:$0 sm:$0xff] }
 0x71a   : > { %3093 = vmatprep.mubr.msk.f32.mxu1 %vm3977_vm1, %v3978_v13  ;;  %3234 = vmatpush3.bf16.msra.mxu1 %v3233_v2 }
 0x71b   : > { %3241 = vmatprep.subr.bf16.mxu1 %v3976_v10 }
 0x7e8   : > { %v1196_v51 = vpop.f32.mrb[4].mxu1 }
 0x7e9   : > { %v3078_v52 = vpop.f32.mrb[5].mxu1  ;;  %v1206_v9 = vadd.f32 %v2918_v8, %v1196_v51 }
 0x7ec   : > { %v1281_v53 = vpop.f32.mrb[6].mxu1 }
 0x7ed   : > { %v1285_v54 = vmul.f32 0.25, %v1281_v53  ;;  %v3083_v55 = vpop.f32.mrb[7].mxu1 }
 0x7ef   : > { %v1286_v56 = vadd.f32 %v4563_v30, %v1285_v54 }
 0x7f1   : > { %v1287_v57 = vsel %vm1039_vm3, %v1286_v56, -inf }
 0x7f2   : > { %1288 = vmax.xlane.f32.xlu1 %v1287_v57 }
 0x803   : > { %1298 = vrot.lane.b32.xlu1 %v4551_v26, %s4909_s8  ;;  %v1481_v26 = vld [vmem:[%s4970_s3 + $0x18] sm:$0xff]  ;;  %s4971_s8 = sld [smem:[#allocation46_spill]] }
 0x809   : > { %v1571_v38 = vld [vmem:[%s4971_s8] sm:$0xff]  ;;  %v1572_v39 = vld [vmem:[%s4971_s8 + $0x8] sm:$0xff]  ;;  %v1573_v41 = vld [vmem:[%s4971_s8 + $0x10] sm:$0xff] }
 0x80a   : > { %v3242_v40 = vpack.c.bf16 %v1572_v39, %v1571_v38  ;;  %v1574_v42 = vld [vmem:[%s4971_s8 + $0x18] sm:$0xff]  ;;  %v1575_v44 = vld [vmem:[%s4971_s8 + $0x20] sm:$0xff]  ;;  %v1576_v45 = vld [vmem:[%s4971_s8 + $0x28] sm:$0xff] }
 0x80b   : > { %v3245_v43 = vpack.c.bf16 %v1574_v42, %v1573_v41  ;;  %v3248_v46 = vpack.c.bf16 %v1576_v45, %v1575_v44  ;;  %v1577_v47 = vld [vmem:[%s4971_s8 + $0x30] sm:$0xff]  ;;  %v1578_v48 = vld [vmem:[%s4971_s8 + $0x38] sm:$0xff]  ;;  %v2938_v44 = vld [vmem:[%s4969_s10 + $0x28] sm:$0xff] }
 0x80c   : > { %v3251_v49 = vpack.c.bf16 %v1578_v48, %v1577_v47 }
 0x87f   : > { %v1289_v58 = vpop.xlane.xlu1 %1288 }
 0x880   : > { %v1290_v59 = vsub.f32 %v1286_v56, %v1289_v58 }
 0x882   : > { %v1291_v60 = vmul.f32 1.442695, %v1290_v59 }
 0x883   : > { %v1299_v61 = vpop.permute.xlu1 %1298 }
 0x884   : > { %3473 = vpow2.f32 %v1291_v60  ;;  %3085 = vmatpush3.msra.mxu0 %v1299_v61 }
 0x885   : > { %3235 = vmatprep.subr.bf16.mxu0 %v3976_v10 }
 0x88e   : > { %v3474_v62 = vpop.eup %3473 }
 0x88f   : > { %v1293_v63 = vsel %vm1039_vm3, %v3474_v62, 0.0 }
 0x890   : > { %1294 = vadd.xlane.f32.xlu0 %v1293_v63  ;;  %v2927_v63 = vld [vmem:[#allocation17] ss:$0 sm:$0xff] }
 0x91d   : > { %v1295_v3 = vpop.xlane.xlu0 %1294 }
 0x91e   : > { %3475 = vrcp.f32 %v1295_v3 }
 0x928   : > { %v3476_v4 = vpop.eup %3475 }
 0x929   : > { %v1297_v5 = vmul.f32 %v3476_v4, %v3474_v62 }
 0x92b   : > { %3087 = vmatmul.mubr.msk.f32.vlgmr.msra.gmra.mrb[2].mxu0 %vm1039_vm3, %v1297_v5 }
 0x92c   : > { %3104 = vmatprep.mubr.msk.f32.mxu0 %vm3977_vm1, %v3978_v13  ;;  %3237 = vmatpush3.bf16.msra.mxu0 %v3236_v25  ;;  %v2930_v25 = vld [vmem:[#allocation20] ss:$0 sm:$0xff] }
 0x92d   : > { %3238 = vmatprep.subr.bf16.mxu0 %v3976_v10 }
 0x9fe   : > { %v1370_v6 = vpop.f32.mrb[2].mxu0 }
 0x9ff   : > { %v3088_v7 = vpop.f32.mrb[3].mxu0  ;;  %3094 = vmatmul.mubr.msk.f32.vlgmr.msra.gmra.mrb[8].mxu1 %vm956_vm2, %v1370_v6 }
 0xa00   : > { %3123 = vmatprep.mubr.msk.f32.mxu1 %vm3977_vm1, %v3978_v13  ;;  %3243 = vmatpush3.bf16.msra.mxu1 %v3242_v40 }
 0xa01   : > { %3244 = vmatprep.subr.bf16.mxu1 %v3976_v10 }
 0xa04   : > { %3246 = vmatpush3.bf16.msra.mxu1 %v3245_v43  ;;  %v2937_v43 = vld [vmem:[%s4969_s10 + $0x20] sm:$0xff] }
 0xa05   : > { %3247 = vmatprep.subr.bf16.mxu1 %v3976_v10  ;;  %v3260_v45 = vpack.c.bf16 %v2938_v44, %v2937_v43  ;;  %v2960_v43 = vld [vmem:[%s4971_s8 + $0x50] sm:$0xff]  ;;  %v2961_v44 = vld [vmem:[%s4971_s8 + $0x58] sm:$0xff] }
 0xa08   : > { %3249 = vmatpush3.bf16.msra.mxu1 %v3248_v46 }
 0xa09   : > { %3250 = vmatprep.subr.bf16.mxu1 %v3976_v10 }
 0xa0c   : > { %3252 = vmatpush3.bf16.msra.mxu1 %v3251_v49 }
 0xa0d   : > { %3142 = vmatprep.subr.mxu1 %v3978_v13 }
 0xad2   : > { %v1443_v11 = vpop.f32.mrb[8].mxu1 }
 0xad3   : > { %v1447_v12 = vadd.f32 %v1443_v11, %v1206_v9  ;;  %v3095_v14 = vpop.f32.mrb[9].mxu1  ;;  %v2931_v11 = vld [vmem:[%s4968_s25 + $0x20] sm:$0xff] }
 0xad5   : > { %v1448_v15 = vadd.f32 %v1447_v12, %v4545_v23  ;;  %v1480_v23 = vld [vmem:[%s4970_s3 + $0x10] sm:$0xff]  ;;  %v2932_v12 = vld [vmem:[%s4968_s25 + $0x28] sm:$0xff] }
 0xad6   : > { %v3239_v27 = vpack.c.bf16 %v1481_v26, %v1480_v23  ;;  %v3254_v14 = vpack.c.bf16 %v2932_v12, %v2931_v11  ;;  %v2945_v11 = vld [vmem:[#allocation11 + $0x1] ss:$0 sm:$0xff] }
 0xad7   : > { %v1451_v16 = vsel %vm835_vm0, %v1448_v15, 0.0 }
 0xad8   : > { %1452 = vadd.xlane.f32.xlu1 %v1451_v16  ;;  %3240 = vmatpush3.bf16.msra.mxu0 %v3239_v27  ;;  %v2934_v16 = vld [vmem:[%s4968_s25 + $0x38] sm:$0xff]  ;;  %v2935_v27 = vld [vmem:[#allocation10 + $0x1] ss:$0 sm:$0xff] }
 0xad9   : > { %3253 = vmatprep.subr.bf16.mxu0 %v3976_v10 }
 0xb65   : > { %v1453_v17 = vpop.xlane.xlu1 %1452 }
 0xb66   : > { %v1454_v18 = vmul.f32 0.03125, %v1453_v17 }
 0xb68   : > { %v1455_v19 = vsub.f32 %v1448_v15, %v1454_v18  ;;  %v2933_v15 = vld [vmem:[%s4968_s25 + $0x30] sm:$0xff] }
 0xb69   : > { %v3257_v17 = vpack.c.bf16 %v2934_v16, %v2933_v15 }
 0xb6a   : > { %v1456_v20 = vmul.f32 %v1455_v19, %v1455_v19 }
 0xb6c   : > { %v1457_v21 = vsel %vm835_vm0, %v1456_v20, 0.0 }
 0xb6d   : > { %1458 = vadd.xlane.f32.xlu0 %v1457_v21 }
 0xbfa   : > { %v1459_v28 = vpop.xlane.xlu0 %1458 }
 0xbfb   : > { %v1460_v29 = vmul.f32 0.03125, %v1459_v28 }
 0xbfd   : > { %v1461_v31 = vadd.f32 1e-12, %v1460_v29 }
 0xbff   : > { %3477 = vrsqrt.f32 %v1461_v31 }
 0xc09   : > { %v3478_v32 = vpop.eup %3477 }
 0xc0a   : > { %v1463_v34 = vmul.f32 %v3478_v32, %v1455_v19 }
 0xc0c   : > { %v1470_v36 = vmul.f32 %v2923_v33, %v1463_v34 }
 0xc0e   : > { %v1477_v37 = vadd.f32 %v2924_v35, %v1470_v36 }
 0xc10   : > { %3105 = vmatmul.mubr.msk.f32.vlgmr.msra.gmra.mrb[4].mxu0 %vm835_vm0, %v1477_v37 }
 0xc11   : > { %3134 = vmatprep.mubr.msk.f32.mxu0 %vm3977_vm1, %v3978_v13  ;;  %3255 = vmatpush3.bf16.msra.mxu0 %v3254_v14 }
 0xc12   : > { %3256 = vmatprep.subr.bf16.mxu0 %v3976_v10 }
 0xc15   : > { %3258 = vmatpush3.bf16.msra.mxu0 %v3257_v17 }
 0xc16   : > { %3137 = vmatprep.subr.mxu0 %v3978_v13 }
 0xce3   : > { %v1558_v51 = vpop.f32.mrb[4].mxu0 }
 0xce4   : > { %v1559_v52 = vadd.f32 %v2925_v50, %v1558_v51  ;;  %v3106_v53 = vpop.f32.mrb[5].mxu0 }
 0xce6   : > { %v1562_v54 = vmul.f32 %v1559_v52, %v1559_v52 }
 0xce8   : > { %v1563_v55 = vmul.f32 %v1562_v54, %v1559_v52 }
 0xcea   : > { %v1564_v56 = vmul.f32 0.044715, %v1563_v55 }
 0xcec   : > { %v1565_v57 = vadd.f32 %v1564_v56, %v1559_v52 }
 0xcee   : > { %v1566_v58 = vmul.f32 0.7978846, %v1565_v57 }
 0xcf0   : > { %3479 = vtanh.f32 %v1566_v58 }
 0xcfa   : > { %v3480_v59 = vpop.eup %3479 }
 0xcfb   : > { %v1568_v60 = vadd.f32 1.0, %v3480_v59 }
 0xcfd   : > { %v1569_v61 = vmul.f32 0.5, %v1568_v60 }
 0xcff   : > { %v1570_v62 = vmul.f32 %v1569_v61, %v1559_v52 }
 0xd01   : > { %3124 = vmatmul.mubr.msk.f32.vlgmr.msra.gmra.mrb[10].mxu1 %vm1586_vm4, %v1570_v62 }
 0xd02   : > { %3144 = vmatprep.mubr.msk.f32.mxu1 %vm3977_vm1, %v3978_v13 }
 0xdd4   : > { %v1656_v0 = vpop.f32.mrb[10].mxu1 }
 0xdd5   : > { %v1657_v1 = vadd.f32 %v2927_v63, %v1656_v0  ;;  %v3125_v2 = vpop.f32.mrb[11].mxu1 }
 0xdd7   : > { %v1660_v3 = vadd.f32 %v1657_v1, %v1477_v37  ;;  %v2940_v1 = vld [vmem:[%s4969_s10 + $0x38] sm:$0xff] }
 0xdd9   : > { %v1663_v4 = vsel %vm835_vm0, %v1660_v3, 0.0 }
 0xdda   : > { %1664 = vadd.xlane.f32.xlu0 %v1663_v4 }
 0xe67   : > { %v1665_v5 = vpop.xlane.xlu0 %1664 }
 0xe68   : > { %v1666_v6 = vmul.f32 0.03125, %v1665_v5 }
 0xe6a   : > { %v1667_v7 = vsub.f32 %v1660_v3, %v1666_v6 }
 0xe6c   : > { %v1668_v8 = vmul.f32 %v1667_v7, %v1667_v7 }
 0xe6e   : > { %v1669_v9 = vsel %vm835_vm0, %v1668_v8, 0.0 }
 0xe6f   : > { %1670 = vadd.xlane.f32.xlu0 %v1669_v9 }
 0xefc   : > { %v1671_v18 = vpop.xlane.xlu0 %1670 }
 0xefd   : > { %v1672_v19 = vmul.f32 0.03125, %v1671_v18 }
 0xeff   : > { %v1673_v20 = vadd.f32 1e-12, %v1672_v19 }
 0xf01   : > { %3481 = vrsqrt.f32 %v1673_v20 }
 0xf0b   : > { %v3482_v21 = vpop.eup %3481 }
 0xf0c   : > { %v1675_v24 = vmul.f32 %v3482_v21, %v1667_v7 }
 0xf0e   : > { %v1682_v23 = vmul.f32 %v2929_v22, %v1675_v24 }
 0xf10   : > { %v4679_v26 = vadd.f32 %v2930_v25, %v1682_v23  ;;  %v2952_v25 = vld [vmem:[%s4970_s3 + $0x20] sm:$0xff]  ;;  %v2953_v23 = vld [vmem:[%s4970_s3 + $0x28] sm:$0xff] }
 0xf12   : > { %3135 = vmatmul.mubr.msk.f32.vlgmr.msra.gmra.mrb[6].mxu0 %vm835_vm0, %v4679_v26 }
 0xf13   : > { %3139 = vmatprep.mubr.msk.f32.mxu0 %vm3977_vm1, %v3978_v13 }
 0xfe5   : > { %v1772_v28 = vpop.f32.mrb[6].mxu0 }
 0xfe6   : > { %v1773_v29 = vadd.f32 %v2935_v27, %v1772_v28  ;;  %v3136_v31 = vpop.f32.mrb[7].mxu0  ;;  %v3266_v27 = vpack.c.bf16 %v2953_v23, %v2952_v25  ;;  %v2955_v28 = vld [vmem:[%s4970_s3 + $0x38] sm:$0xff]  ;;  %v2597_v23 = vld [vmem:[%s4977_s21] sm:$0xff] }
 0xfe8   : > { %1784 = vrot.lane.b32.xlu0 %v1773_v29, %s3979_s0  ;;  %s4974_s0 = smov 64  }
 0xfec   : > { %2031 = vrot.lane.b32.xlu0 %v1773_v29, %s4972_s5 }
 0xff0   : > { %2029 = vrot.lane.b32.xlu0 %v1773_v29, %s4973_s29 }
0x105a   : > { %v1785_v32 = vpop.permute.xlu0 %1784 }
0x105b   : > { %3138 = vmatpush3.xpose.msk.msra.mxu0 %vm956_vm2, %v1785_v32 }
0x105c   : > { %3259 = vmatprep.subr.bf16.mxu0 %v3976_v10 }
0x105e   : > { %3140 = vmatmul.mubr.msk.f32.vlgmr.msra.gmra.mrb[8].mxu0 %vm956_vm2, %v1773_v29  ;;  %v2032_v49 = vpop.permute.xlu0 %2031 }
0x105f   : > { %3151 = vmatprep.mubr.msk.f32.mxu0 %vm3977_vm1, %v3978_v13  ;;  %3261 = vmatpush3.bf16.msra.mxu0 %v3260_v45  ;;  %v3275_v45 = vpack.c.bf16 %v2961_v44, %v2960_v43 }
0x1060   : > { %3159 = vmatprep.subr.mxu0 %v3978_v13 }
0x1062   : > { %v2030_v51 = vpop.permute.xlu0 %2029 }
0x1131   : > { %v1856_v33 = vpop.f32.mrb[8].mxu0 }
0x1132   : > { %v1860_v34 = vmul.f32 0.25, %v1856_v33  ;;  %v3141_v35 = vpop.f32.mrb[9].mxu0 }
0x1133   : > { %v2950_v35 = vld [vmem:[#allocation13 + $0x1] ss:$0 sm:$0xff] }
0x1134   : > { %v1861_v36 = vadd.f32 %v4563_v30, %v1860_v34 }
0x1136   : > { %v1862_v37 = vsel %vm1039_vm3, %v1861_v36, -inf }
0x1137   : > { %1863 = vmax.xlane.f32.xlu1 %v1862_v37  ;;  %v2951_v37 = vld [vmem:[#allocation14 + $0x1] ss:$0 sm:$0xff] }
0x11c4   : > { %v1864_v38 = vpop.xlane.xlu1 %1863 }
0x11c5   : > { %v1865_v39 = vsub.f32 %v1861_v36, %v1864_v38 }
0x11c7   : > { %v1866_v40 = vmul.f32 1.442695, %v1865_v39 }
0x11c9   : > { %3483 = vpow2.f32 %v1866_v40  ;;  %v2958_v40 = vld [vmem:[%s4971_s8 + $0x40] sm:$0xff] }
0x11d3   : > { %v3484_v41 = vpop.eup %3483 }
0x11d4   : > { %v1868_v42 = vsel %vm1039_vm3, %v3484_v41, 0.0 }
0x11d5   : > { %1869 = vadd.xlane.f32.xlu1 %v1868_v42 }
0x11e6   : > { %1873 = vrot.lane.b32.xlu1 %v1773_v29, %s4974_s0  ;;  %s4976_s0 = sld [smem:[#allocation47_spill]] }
0x1262   : > { %v1870_v46 = vpop.xlane.xlu1 %1869 }
0x1263   : > { %3485 = vrcp.f32 %v1870_v46  ;;  %v2962_v46 = vld [vmem:[%s4971_s8 + $0x60] sm:$0xff] }
0x1266   : > { %v1874_v47 = vpop.permute.xlu1 %1873 }
0x1267   : > { %3143 = vmatpush3.msra.mxu1 %v1874_v47  ;;  %v2963_v47 = vld [vmem:[%s4971_s8 + $0x68] sm:$0xff] }
0x1268   : > { %3154 = vmatprep.subr.mxu1 %v3978_v13 }
0x126d   : > { %v3486_v48 = vpop.eup %3485 }
0x126e   : > { %v1872_v50 = vmul.f32 %v3486_v48, %v3484_v41  ;;  %v2959_v41 = vld [vmem:[%s4971_s8 + $0x48] sm:$0xff]  ;;  %v3278_v48 = vpack.c.bf16 %v2963_v47, %v2962_v46 }
0x126f   : > { %v3272_v42 = vpack.c.bf16 %v2959_v41, %v2958_v40 }
0x1270   : > { %3145 = vmatmul.mubr.msk.f32.vlgmr.msra.gmra.mrb[12].mxu1 %vm1039_vm3, %v1872_v50  ;;  %v2965_v50 = vld [vmem:[%s4971_s8 + $0x78] sm:$0xff] }
0x1271   : > { %3155 = vmatpush3.xpose.msk.msra.mxu1 %vm956_vm2, %v2032_v49  ;;  %3156 = vmatprep.mubr.msk.f32.mxu1 %vm3977_vm1, %v3978_v13  ;;  %v2964_v49 = vld [vmem:[%s4971_s8 + $0x70] sm:$0xff] }
0x1272   : > { %3262 = vmatprep.subr.bf16.mxu1 %v3976_v10 }
0x1274   : > { %3157 = vmatmul.mubr.msk.f32.vlgmr.msra.gmra.mrb[14].mxu1 %vm956_vm2, %v2030_v51  ;;  %v3281_v51 = vpack.c.bf16 %v2965_v50, %v2964_v49 }
0x1275   : > { %3168 = vmatprep.mubr.msk.f32.mxu1 %vm3977_vm1, %v3978_v13 }
0x1343   : > { %v1945_v52 = vpop.f32.mrb[12].mxu1 }
0x1344   : > { %v3146_v53 = vpop.f32.mrb[13].mxu1  ;;  %3152 = vmatmul.mubr.msk.f32.vlgmr.msra.gmra.mrb[10].mxu0 %vm956_vm2, %v1945_v52  ;;  %v2956_v52 = vld [vmem:[#allocation16 + $0x1] ss:$0 sm:$0xff] }
0x1345   : > { %3161 = vmatprep.mubr.msk.f32.mxu0 %vm3977_vm1, %v3978_v13 }
0x1347   : > { %v2103_v54 = vpop.f32.mrb[14].mxu1 }
0x1348   : > { %v2107_v55 = vmul.f32 0.25, %v2103_v54  ;;  %v3158_v56 = vpop.f32.mrb[15].mxu1 }
0x134a   : > { %v2108_v57 = vadd.f32 %v4563_v30, %v2107_v55  ;;  %v2939_v30 = vld [vmem:[%s4969_s10 + $0x30] sm:$0xff] }
0x134b   : > { %v3263_v2 = vpack.c.bf16 %v2940_v1, %v2939_v30  ;;  %v2966_v30 = vld [vmem:[#allocation17 + $0x1] ss:$0 sm:$0xff] }
0x134c   : > { %v2109_v58 = vsel %vm1039_vm3, %v2108_v57, -inf }
0x134d   : > { %2110 = vmax.xlane.f32.xlu0 %v2109_v58  ;;  %3264 = vmatpush3.bf16.msra.mxu1 %v3263_v2 }
0x134e   : > { %3271 = vmatprep.subr.bf16.mxu1 %v3976_v10 }
0x1363   : > { %2120 = vrot.lane.b32.xlu0 %v1773_v29, %s4975_s7  ;;  %s830_s7 = scalar_lea.vmem [#allocation23], %s4485_s6 }
0x13da   : > { %v2111_v59 = vpop.xlane.xlu0 %2110 }
0x13db   : > { %v2112_v60 = vsub.f32 %v2108_v57, %v2111_v59 }
0x13dd   : > { %v2113_v61 = vmul.f32 1.442695, %v2112_v60 }
0x13de   : > { %v2121_v62 = vpop.permute.xlu0 %2120 }
0x13df   : > { %3487 = vpow2.f32 %v2113_v61  ;;  %3160 = vmatpush3.msra.mxu0 %v2121_v62 }
0x13e0   : > { %3265 = vmatprep.subr.bf16.mxu0 %v3976_v10 }
0x13e9   : > { %v3488_v63 = vpop.eup %3487 }
0x13ea   : > { %v2115_v0 = vsel %vm1039_vm3, %v3488_v63, 0.0 }
0x13eb   : > { %2116 = vadd.xlane.f32.xlu1 %v2115_v0 }
0x1417   : > { %v2018_v3 = vpop.f32.mrb[10].mxu0 }
0x1418   : > { %v3153_v4 = vpop.f32.mrb[11].mxu0  ;;  %v2028_v12 = vadd.f32 %v2945_v11, %v2018_v3 }
0x1478   : > { %v2117_v5 = vpop.xlane.xlu1 %2116 }
0x1479   : > { %3489 = vrcp.f32 %v2117_v5 }
0x1483   : > { %v3490_v6 = vpop.eup %3489 }
0x1484   : > { %v2119_v7 = vmul.f32 %v3490_v6, %v3488_v63 }
0x1486   : > { %3162 = vmatmul.mubr.msk.f32.vlgmr.msra.gmra.mrb[12].mxu0 %vm1039_vm3, %v2119_v7 }
0x1487   : > { %3179 = vmatprep.mubr.msk.f32.mxu0 %vm3977_vm1, %v3978_v13  ;;  %3267 = vmatpush3.bf16.msra.mxu0 %v3266_v27  ;;  %v2598_v27 = vld [vmem:[%s4977_s21 + $0x8] sm:$0xff] }
0x1488   : > { %3268 = vmatprep.subr.bf16.mxu0 %v3976_v10 }
0x1559   : > { %v2192_v8 = vpop.f32.mrb[12].mxu0 }
0x155a   : > { %v3163_v9 = vpop.f32.mrb[13].mxu0  ;;  %3169 = vmatmul.mubr.msk.f32.vlgmr.msra.gmra.mrb[16].mxu1 %vm956_vm2, %v2192_v8 }
0x155b   : > { %3198 = vmatprep.mubr.msk.f32.mxu1 %vm3977_vm1, %v3978_v13  ;;  %3273 = vmatpush3.bf16.msra.mxu1 %v3272_v42 }
0x155c   : > { %3274 = vmatprep.subr.bf16.mxu1 %v3976_v10 }
0x155f   : > { %3276 = vmatpush3.bf16.msra.mxu1 %v3275_v45 }
0x1560   : > { %3277 = vmatprep.subr.bf16.mxu1 %v3976_v10 }
0x1563   : > { %3279 = vmatpush3.bf16.msra.mxu1 %v3278_v48 }
0x1564   : > { %3280 = vmatprep.subr.bf16.mxu1 %v3976_v10 }
0x1567   : > { %3282 = vmatpush3.bf16.msra.mxu1 %v3281_v51 }
0x162d   : > { %v2265_v14 = vpop.f32.mrb[16].mxu1 }
0x162e   : > { %v2269_v15 = vadd.f32 %v2265_v14, %v2028_v12  ;;  %v3170_v16 = vpop.f32.mrb[17].mxu1  ;;  %v2519_v12 = vld [vmem:[%s4976_s0] sm:$0xff]  ;;  %v2520_v14 = vld [vmem:[%s4976_s0 + $0x8] sm:$0xff] }
0x162f   : > { %v2521_v16 = vld [vmem:[%s4976_s0 + $0x10] sm:$0xff] }
0x1630   : > { %v2270_v17 = vadd.f32 %v2269_v15, %v4679_v26  ;;  %v2954_v26 = vld [vmem:[%s4970_s3 + $0x30] sm:$0xff]  ;;  %v3284_v15 = vpack.c.bf16 %v2520_v14, %v2519_v12  ;;  %s4979_s3 = sld [smem:[#allocation50_spill]] }
0x1631   : > { %v3269_v29 = vpack.c.bf16 %v2955_v28, %v2954_v26  ;;  %v2969_v26 = vld [vmem:[#allocation20 + $0x1] ss:$0 sm:$0xff] }
0x1632   : > { %v2275_v18 = vsel %vm835_vm0, %v2270_v17, 0.0 }
0x1633   : > { %2276 = vadd.xlane.f32.xlu1 %v2275_v18  ;;  %3270 = vmatpush3.bf16.msra.mxu0 %v3269_v29  ;;  %v3290_v29 = vpack.c.bf16 %v2598_v27, %v2597_v23 }
0x1634   : > { %3283 = vmatprep.subr.bf16.mxu0 %v3976_v10 }
0x1636   : > { %s4823_s8 = scalar_lea.hbm %s4979_s3, %s2972_s18 }
0x16c0   : > { %v2277_v19 = vpop.xlane.xlu1 %2276 }
0x16c1   : > { %v2278_v20 = vmul.f32 0.03125, %v2277_v19 }
0x16c3   : > { %v2279_v21 = vsub.f32 %v2270_v17, %v2278_v20  ;;  %v2522_v17 = vld [vmem:[%s4976_s0 + $0x18] sm:$0xff]  ;;  %s2689_s0 = sshll.u32 %s830_s7, 4  ;;  %s4825_s0 = int_to_ptr.vmem [resolvable:$true] %s2689_s0 }
0x16c4   : > { %v3287_v18 = vpack.c.bf16 %v2522_v17, %v2521_v16  ;;  %s3865_s29 = scalar_lea.vmem %s4825_s0, 16  ;;  %p3872_p10 = scmp.lt.s32.totalorder %s4825_s0, %s3870_s16 }
0x16c5   : > { %v2280_v22 = vmul.f32 %v2279_v21, %v2279_v21  ;;  %p3866_p3 = scmp.ne.s32.totalorder %s4825_s0, %s3865_s29 }
0x16c7   : > { %v2281_v24 = vsel %vm835_vm0, %v2280_v22, 0.0  ;;  %p3867_p7 = pnand %p3866_p3, %p4980_p8 }
0x16c8   : > { %2282 = vadd.xlane.f32.xlu1 %v2281_v24  ;;  %v2968_v24 = vld [vmem:[#allocation19 + $0x1] ss:$0 sm:$0xff] }
0x16c9   : > { %p3868_p12 = pneg %p3867_p7 }
0x1755   : > { %v2283_v31 = vpop.xlane.xlu1 %2282 }
0x1756   : > { %v2284_v32 = vmul.f32 0.03125, %v2283_v31 }
0x1758   : > { %v2285_v33 = vadd.f32 1e-12, %v2284_v32  ;;  %v2599_v32 = vld [vmem:[%s4977_s21 + $0x10] sm:$0xff] }
0x175a   : > { %3491 = vrsqrt.f32 %v2285_v33  ;;  %v2600_v33 = vld [vmem:[%s4977_s21 + $0x18] sm:$0xff] }
0x1764   : > { %v3492_v34 = vpop.eup %3491 }
0x1765   : > { %v2287_v36 = vmul.f32 %v3492_v34, %v2279_v21  ;;  %v3293_v34 = vpack.c.bf16 %v2600_v33, %v2599_v32 }
0x1767   : > { %v2294_v38 = vmul.f32 %v2950_v35, %v2287_v36  ;;  %v2523_v35 = vld [vmem:[#allocation22] sm:$0x1] }
0x1769   : > { %v2301_v39 = vadd.f32 %v2951_v37, %v2294_v38 }
0x176b   : > { %3180 = vmatmul.mubr.msk.f32.vlgmr.msra.gmra.mrb[14].mxu0 %vm835_vm0, %v2301_v39 }
0x176c   : > { %3209 = vmatprep.mubr.msk.f32.mxu0 %vm3977_vm1, %v3978_v13  ;;  %3285 = vmatpush3.bf16.msra.mxu0 %v3284_v15 }
0x176d   : > { %3286 = vmatprep.subr.bf16.mxu0 %v3976_v10 }
0x1770   : > { %3288 = vmatpush3.bf16.msra.mxu0 %v3287_v18 }
0x1771   : > { %3289 = vmatprep.subr.bf16.mxu0 %v3976_v10 }
0x183e   : > { %v2384_v53 = vpop.f32.mrb[14].mxu0 }
0x183f   : > { %v2385_v54 = vadd.f32 %v2956_v52, %v2384_v53  ;;  %v3181_v55 = vpop.f32.mrb[15].mxu0 }
0x1841   : > { %v2388_v56 = vmul.f32 %v2385_v54, %v2385_v54 }
0x1843   : > { %v2389_v57 = vmul.f32 %v2388_v56, %v2385_v54 }
0x1845   : > { %v2390_v58 = vmul.f32 0.044715, %v2389_v57 }
0x1847   : > { %v2391_v59 = vadd.f32 %v2390_v58, %v2385_v54 }
0x1849   : > { %v2392_v60 = vmul.f32 0.7978846, %v2391_v59 }
0x184b   : > { %3493 = vtanh.f32 %v2392_v60 }
0x1855   : > { %v3494_v61 = vpop.eup %3493 }
0x1856   : > { %v2394_v62 = vadd.f32 1.0, %v3494_v61 }
0x1858   : > { %v2395_v63 = vmul.f32 0.5, %v2394_v62 }
0x185a   : > { %v2396_v0 = vmul.f32 %v2395_v63, %v2385_v54 }
0x185c   : > { %3199 = vmatmul.mubr.msk.f32.vlgmr.msra.gmra.mrb[18].mxu1 %vm1586_vm4, %v2396_v0 }
0x192f   : > { %v2483_v1 = vpop.f32.mrb[18].mxu1 }
0x1930   : > { %v2484_v2 = vadd.f32 %v2966_v30, %v2483_v1  ;;  %v3200_v3 = vpop.f32.mrb[19].mxu1 }
0x1932   : > { %v2487_v4 = vadd.f32 %v2484_v2, %v2301_v39 }
0x1934   : > { %v2492_v5 = vsel %vm835_vm0, %v2487_v4, 0.0 }
0x1935   : > { %2493 = vadd.xlane.f32.xlu1 %v2492_v5 }
0x19c2   : > { %v2494_v6 = vpop.xlane.xlu1 %2493 }
0x19c3   : > { %v2495_v7 = vmul.f32 0.03125, %v2494_v6 }
0x19c5   : > { %v2496_v8 = vsub.f32 %v2487_v4, %v2495_v7 }
0x19c7   : > { %v2497_v9 = vmul.f32 %v2496_v8, %v2496_v8 }
0x19c9   : > { %v2498_v11 = vsel %vm835_vm0, %v2497_v9, 0.0 }
0x19ca   : > { %2499 = vadd.xlane.f32.xlu0 %v2498_v11 }
0x1a57   : > { %v2500_v19 = vpop.xlane.xlu0 %2499 }
0x1a58   : > { %v2501_v20 = vmul.f32 0.03125, %v2500_v19 }
0x1a5a   : > { %v2502_v21 = vadd.f32 1e-12, %v2501_v20 }
0x1a5c   : > { %3495 = vrsqrt.f32 %v2502_v21 }
0x1a66   : > { %v3496_v22 = vpop.eup %3495 }
0x1a67   : > { %v2504_v25 = vmul.f32 %v3496_v22, %v2496_v8 }
0x1a69   : > { %v2511_v28 = vmul.f32 %v2968_v24, %v2504_v25 }
0x1a6b   : > { %v2518_v31 = vadd.f32 %v2969_v26, %v2511_v28 }
0x1a6d   : > { %3210 = vmatmul.mubr.msk.f32.vlgmr.msra.gmra.mrb[16].mxu0 %vm835_vm0, %v2518_v31 }
0x1a6e   : > { %3291 = vmatpush3.bf16.msra.mxu0 %v3290_v29  ;;  %3220 = vmatprep.mubr.msk.f32.mxu0 %vm3977_vm1, %v3978_v13 }
0x1a6f   : > { %3292 = vmatprep.subr.bf16.mxu0 %v3976_v10  ;;  %v2601_v10 = vld [vmem:[%s4978_s30] sm:$0x1]  ;;  %s3871_s30 = scalar_lea.vmem %s3870_s16, 32 }
0x1a70   : > { %p3873_p4 = scmp.lt.s32.totalorder %s3871_s30, %s3865_s29 }
0x1a72   : > { %3294 = vmatpush3.bf16.msra.mxu0 %v3293_v34  ;;  %p3874_p1 = por %p3873_p4, %p3872_p10 }
0x1a74   : > { %p3875_p13 = pnand %p3874_p1, %p3868_p12 }
0x1b40   : > { %v2593_v36 = vpop.f32.mrb[16].mxu0 }
0x1b41   : > { %v2594_v37 = vadd.f32 %v2593_v36, %v2523_v35  ;;  %v3211_v38 = vpop.f32.mrb[17].mxu0 }
0x1b43   : > { %3221 = vmatmul.mubr.msk.f32.vlgmr.msra.gmra.mrb[18].mxu0 %vm835_vm0, %v2594_v37 }
0x1c16   : > { %v2671_v13 = vpop.f32.mrb[18].mxu0 }
0x1c17   : > { %v2672_v39 = vadd.f32 %v2671_v13, %v2601_v10  ;;  %v3222_v40 = vpop.f32.mrb[19].mxu0 }
0x1c19   : > { %2675 = vst [vmem:[%s830_s7] sm:$0x1] %v2672_v39 }
0x1c1a   : > { %3878 = shalt.err (!%p3875_p13)
}
0x1c1b   : > { %s3879_s6 = scalar_lea.hbm %s4823_s8, 16  ;;  %s3883_s12 = scalar_lea.hbm %s4979_s3, 32 }
0x1c1c   : > { %p3880_p0 = scmp.ne.s32.totalorder %s4823_s8, %s3879_s6  ;;  %p3884_p11 = scmp.lt.u32.totalorder %s4823_s8, %s4979_s3 }
0x1c1d   : > { %p3885_p5 = scmp.lt.u32.totalorder %s3883_s12, %s3879_s6  ;;  %p3887_p3 = scmp.lt.u32.totalorder %s3879_s6, %s4823_s8 }
0x1c1e   : > { %p3881_p2 = pnand %p3880_p0, %p4980_p8 }
0x1c1f   : > { %p3886_p9 = por %p3885_p5, %p3884_p11 }
0x1c20   : > { %p3882_p6 = pneg %p3881_p2 }
0x1c21   : > { %p3888_p7 = por %p3887_p3, %p3886_p9 }
0x1c23   : > { %p3889_p12 = pnand %p3888_p7, %p3882_p6 }
0x1c25   : > { %3892 = shalt.err (!%p3889_p12)
}
0x1c26   : > { %3343 = dma.vmem_to_hbm [thread:$0]  (%p4980_p8), %s4825_s0, 16, %s4823_s8, %s2677_s9  }
0x1c27 PF: > { %s2701_s29 = sand.u32 1, %s3947_s1   ;;  %p4981_p10 = scmp.ne.s32.totalorder %s4947_s28, 0 }
0x1c28   : > { %p4982_p4 = scmp.ge.s32.totalorder %s3959_s24, 2  ;;  %s2702_s16 = scalar_lea.sflag [#allocation4], %s2701_s29 }
0x1c2a   : > { %p3387_p1 = pnand %p4982_p4, %p4981_p10 }
0x1c2c   : > { %3942 = dma.done.wait (!%p3387_p1), %s2702_s16, 16  }
0x1c2d   : > { %3944 = vsyncadd (!%p3387_p1), %s2702_s16, 4294967280  ;;  %p41_p13 = scmp.ge.s32.totalorder %s4382_s4, 4   ;;  %s4983_s1 = smov %s3951_s22 }
0x1c2e   : > { %s4984_s22 = smov %s3955_s23  ;;  %s4985_s23 = smov %s4394_s19 }
0x1c2f   : > { %s4986_s24 = smov %s4382_s4  ;;  %43 = sbr.rel (!%p41_p13) target bundleno = 29 (0x1d), region = 214 }
0x1c36   :  { %2706 = vsyncpa [#allocation3], 1 }
0x1c37   :  { %2708 = vsyncpa [#allocation3 + $0x1], 1 }
0x1c38   :  { %2709 = vsyncpa [#allocation6], 1 }
0x1c39   :  { %2711 = vsyncpa [#allocation6 + $0x1], 1 }
0x1c3a   :  { %2712 = vsyncpa [#allocation9], 1 }
0x1c3b   :  { %2713 = vsyncpa [#allocation12], 1 }
0x1c3c   :  { %2714 = vsyncpa [#allocation15], 1 }
0x1c3d   :  { %2715 = vsyncpa [#allocation18], 1 }
0x1c3e   :  { %2716 = vsyncpa [#allocation21], 1 }
0x1c3f   :  { %2717 = vsyncpa [#allocation4], 1 }
0x1c40   :  { %2719 = vsyncpa [#allocation4 + $0x1], 1 }

</bundles_post_ra>
